<compile_context>
chip_gen: v7x
topology: tpu7x:2x2x1
jax: 0.10.0
libtpu: 0.0.40
codegen_flags: <defaults>
</compile_context>

<pallas_src>
import functools

import jax
import jax.numpy as jnp
from jax.experimental import pallas as pl
from jax.experimental.pallas import tpu as pltpu


def _round_up(x, m):
    return (x + m - 1) // m * m


def _make_attention_kernel(n_m):
    """Kernel over one batch tile: M x [tb, C] embeddings -> [tb, C] output."""

    def kernel(*refs):
        x_refs = refs[:n_m]
        w_ref, b_ref, out_ref = refs[n_m], refs[n_m + 1], refs[n_m + 2]

        w = w_ref[...].astype(jnp.float32)                 # [1, C] scoring vector (resident)
        bias = b_ref[0]                                    # scalar bias (SMEM); cancels in the
                                                           # dim=1 softmax, kept for fidelity
        xs = [r[...].astype(jnp.float32) for r in x_refs]  # M x [tb, C]

        # Per-slot logits: lane reduction over C (XLU), one [tb, 1] column per slot.
        logits = [jnp.sum(x * w, axis=-1, keepdims=True) + bias for x in xs]

        # Numerically stable softmax across the M slots, done column-wise on the
        # [tb, 1] logits (pure VPU, no lane concatenation needed).
        m_max = logits[0]
        for l in logits[1:]:
            m_max = jnp.maximum(m_max, l)
        es = [jnp.exp(l - m_max) for l in logits]
        denom = es[0]
        for e in es[1:]:
            denom = denom + e
        inv = 1.0 / denom                                   # [tb, 1]

        # Weighted combination of the M embeddings.
        acc = xs[0] * (es[0] * inv)
        for x, e in zip(xs[1:], es[1:]):
            acc = acc + x * (e * inv)
        out_ref[...] = acc.astype(out_ref.dtype)

    return kernel


def _attention_pallas(inputs, w, b, *, block_b):
    n_m = len(inputs)
    n_b, n_c = inputs[0].shape
    dtype = inputs[0].dtype
    itemsize = jnp.dtype(dtype).itemsize
    block_b = max(8, (block_b // 8) * 8)

    # --- batch-tile selection against a conservative VMEM budget -----------------
    padded_c = _round_up(n_c, 128)                      # lane padding of a (tb, C) tile
    bytes_in_row = padded_c * itemsize                  # one lane-padded input-dtype row
    bytes_f32_row = padded_c * 4                        # one lane-padded f32 working row
    # double-buffered M input tiles + output tile, plus in-kernel f32 working set
    per_row = 2 * (n_m + 1) * bytes_in_row + (2 * n_m + 4) * bytes_f32_row
    vmem_budget = 32 * 1024 * 1024                      # safe even on v7x (64 MiB physical)
    cap = max(8, (vmem_budget // per_row) // 8 * 8)

    tb = max(8, min(block_b, cap, _round_up(n_b, 8)))
    if tb >= n_b and n_b > 8:
        # ensure at least 2 grid steps: DMA/compute overlap + megacore split on v7x
        tb = max(8, _round_up(pl.cdiv(n_b, 2), 8))
    grid = (pl.cdiv(n_b, tb),)                          # ragged tail handled by Pallas masking

    vmem_limit = int(min(64 * 1024 * 1024,
                         max(32 * 1024 * 1024, 3 * (per_row * tb) // 2)))

    x_spec = pl.BlockSpec((tb, n_c), lambda i: (i, 0))  # streamed batch tiles
    in_specs = [x_spec] * n_m + [
        pl.BlockSpec((1, n_c), lambda i: (0, 0)),               # resident scoring weight
        pl.BlockSpec(memory_space=pltpu.MemorySpace.SMEM),      # scalar bias
    ]

    b_smem = jnp.asarray(b, jnp.float32).reshape((1,))

    return pl.pallas_call(
        _make_attention_kernel(n_m),
        out_shape=jax.ShapeDtypeStruct((n_b, n_c), dtype),
        grid=grid,
        in_specs=in_specs,
        out_specs=pl.BlockSpec((tb, n_c), lambda i: (i, 0)),
        compiler_params=pltpu.CompilerParams(
            dimension_semantics=("parallel",),          # split batch tiles across TCs (v7x)
            vmem_limit_bytes=vmem_limit),
    )(*inputs, w, b_smem)


@functools.partial(jax.jit, static_argnames=("block_b",))
def attention_forward(inputs, w, b, *, block_b=4096):
    """inputs: list/tuple of M [B, C] embeddings; w: [1, C] Linear weight; b: [1] bias."""
    return _attention_pallas(tuple(inputs), w, b, block_b=block_b)


if __name__ == "__main__":
    M, C = 4, 32                                        # number of stacked embeddings, in_channels

    key = jax.random.PRNGKey(0)
    kw, kb = jax.random.split(key)
    w = 0.1 * jax.random.normal(kw, (1, C), jnp.float32)   # Linear(C, 1).weight
    b = 0.1 * jax.random.normal(kb, (1,), jnp.float32)     # Linear(C, 1).bias

    def reference(inputs):
        # Same math as the PyTorch forward (elementwise, so no matmul-precision drift).
        stacked = jnp.stack(inputs, axis=1)                                  # [B, M, C]
        logits = jnp.sum(stacked * w[0][None, None, :], axis=-1) + b[0]      # [B, M]
        p = jax.nn.softmax(logits, axis=1)[..., None]                        # [B, M, 1]
        return jnp.sum(stacked * p, axis=1)                                  # [B, C]

    for B in (256, 100):                                # divisible batch + ragged-tail batch
        keys = jax.random.split(jax.random.PRNGKey(B), M)
        inputs = tuple(jax.random.normal(keys[m], (B, C), jnp.float32) for m in range(M))

        out = attention_forward(inputs, w, b)
        jax.block_until_ready(out)
        ref = reference(inputs)

        assert out.shape == (B, C) and out.dtype == jnp.float32
        assert jnp.allclose(out, ref, atol=1e-5, rtol=1e-5), float(jnp.max(jnp.abs(out - ref)))

    print("KERNEL_OK")
</pallas_src>

<mosaic_0001>
module attributes {stable_mosaic.version = 11 : i64} {
  func.func @kernel(%arg0: i32, %arg1: memref<128x32xf32, #tpu.memory_space<vmem>>, %arg2: memref<128x32xf32, #tpu.memory_space<vmem>>, %arg3: memref<128x32xf32, #tpu.memory_space<vmem>>, %arg4: memref<128x32xf32, #tpu.memory_space<vmem>>, %arg5: memref<1x32xf32, #tpu.memory_space<vmem>>, %arg6: memref<1xf32, #tpu.memory_space<smem>>, %arg7: memref<128x32xf32, #tpu.memory_space<vmem>>) attributes {dimension_semantics = [#tpu.dimension_semantics<parallel>], iteration_bounds = array<i64: 2>, scalar_prefetch = 0 : i64, scratch_operands = 0 : i64, tpu.core_type = #tpu.core_type<tc>, window_params = [{transform_indices = @transform_0, window_bounds = array<i64: 128, 32>}, {transform_indices = @transform_1, window_bounds = array<i64: 128, 32>}, {transform_indices = @transform_2, window_bounds = array<i64: 128, 32>}, {transform_indices = @transform_3, window_bounds = array<i64: 128, 32>}, {pipeline_mode = #tpu.pipeline_mode<synchronous>, transform_indices = @transform_4, window_bounds = array<i64: 1, 32>}, {transform_indices = @transform_5, window_bounds = array<i64: 1>}, {transform_indices = @transform_6, window_bounds = array<i64: 128, 32>}]} {
    %c0 = arith.constant 0 : index
    %c0_0 = arith.constant 0 : index
    %0 = vector.load %arg5[%c0, %c0_0] : memref<1x32xf32, #tpu.memory_space<vmem>>, vector<1x32xf32>
    %c0_1 = arith.constant 0 : index
    %1 = memref.load %arg6[%c0_1] : memref<1xf32, #tpu.memory_space<smem>>
    %c0_2 = arith.constant 0 : index
    %c0_3 = arith.constant 0 : index
    %2 = vector.load %arg1[%c0_2, %c0_3] : memref<128x32xf32, #tpu.memory_space<vmem>>, vector<128x32xf32>
    %c0_4 = arith.constant 0 : index
    %c0_5 = arith.constant 0 : index
    %3 = vector.load %arg2[%c0_4, %c0_5] : memref<128x32xf32, #tpu.memory_space<vmem>>, vector<128x32xf32>
    %c0_6 = arith.constant 0 : index
    %c0_7 = arith.constant 0 : index
    %4 = vector.load %arg3[%c0_6, %c0_7] : memref<128x32xf32, #tpu.memory_space<vmem>>, vector<128x32xf32>
    %c0_8 = arith.constant 0 : index
    %c0_9 = arith.constant 0 : index
    %5 = vector.load %arg4[%c0_8, %c0_9] : memref<128x32xf32, #tpu.memory_space<vmem>>, vector<128x32xf32>
    %6 = vector.broadcast %0 : vector<1x32xf32> to vector<128x32xf32>
    %7 = arith.mulf %2, %6 : vector<128x32xf32>
    %cst = arith.constant dense<0.000000e+00> : vector<128xf32>
    %8 = vector.multi_reduction <add>, %7, %cst [1] : vector<128x32xf32> to vector<128xf32>
    %9 = vector.shape_cast %8 : vector<128xf32> to vector<128x1xf32>
    %10 = vector.broadcast %1 : f32 to vector<128x1xf32>
    %11 = arith.addf %9, %10 : vector<128x1xf32>
    %12 = vector.broadcast %0 : vector<1x32xf32> to vector<128x32xf32>
    %13 = arith.mulf %3, %12 : vector<128x32xf32>
    %cst_10 = arith.constant dense<0.000000e+00> : vector<128xf32>
    %14 = vector.multi_reduction <add>, %13, %cst_10 [1] : vector<128x32xf32> to vector<128xf32>
    %15 = vector.shape_cast %14 : vector<128xf32> to vector<128x1xf32>
    %16 = vector.broadcast %1 : f32 to vector<128x1xf32>
    %17 = arith.addf %15, %16 : vector<128x1xf32>
    %18 = vector.broadcast %0 : vector<1x32xf32> to vector<128x32xf32>
    %19 = arith.mulf %4, %18 : vector<128x32xf32>
    %cst_11 = arith.constant dense<0.000000e+00> : vector<128xf32>
    %20 = vector.multi_reduction <add>, %19, %cst_11 [1] : vector<128x32xf32> to vector<128xf32>
    %21 = vector.shape_cast %20 : vector<128xf32> to vector<128x1xf32>
    %22 = vector.broadcast %1 : f32 to vector<128x1xf32>
    %23 = arith.addf %21, %22 : vector<128x1xf32>
    %24 = vector.broadcast %0 : vector<1x32xf32> to vector<128x32xf32>
    %25 = arith.mulf %5, %24 : vector<128x32xf32>
    %cst_12 = arith.constant dense<0.000000e+00> : vector<128xf32>
    %26 = vector.multi_reduction <add>, %25, %cst_12 [1] : vector<128x32xf32> to vector<128xf32>
    %27 = vector.shape_cast %26 : vector<128xf32> to vector<128x1xf32>
    %28 = vector.broadcast %1 : f32 to vector<128x1xf32>
    %29 = arith.addf %27, %28 : vector<128x1xf32>
    %30 = arith.maximumf %11, %17 : vector<128x1xf32>
    %31 = arith.maximumf %30, %23 : vector<128x1xf32>
    %32 = arith.maximumf %31, %29 : vector<128x1xf32>
    %33 = arith.subf %11, %32 : vector<128x1xf32>
    %34 = math.exp %33 : vector<128x1xf32>
    %35 = arith.subf %17, %32 : vector<128x1xf32>
    %36 = math.exp %35 : vector<128x1xf32>
    %37 = arith.subf %23, %32 : vector<128x1xf32>
    %38 = math.exp %37 : vector<128x1xf32>
    %39 = arith.subf %29, %32 : vector<128x1xf32>
    %40 = math.exp %39 : vector<128x1xf32>
    %41 = arith.addf %34, %36 : vector<128x1xf32>
    %42 = arith.addf %41, %38 : vector<128x1xf32>
    %43 = arith.addf %42, %40 : vector<128x1xf32>
    %cst_13 = arith.constant 1.000000e+00 : f32
    %44 = vector.broadcast %cst_13 : f32 to vector<128x1xf32>
    %45 = arith.divf %44, %43 : vector<128x1xf32>
    %46 = arith.mulf %34, %45 : vector<128x1xf32>
    %47 = vector.broadcast %46 : vector<128x1xf32> to vector<128x32xf32>
    %48 = arith.mulf %2, %47 : vector<128x32xf32>
    %49 = arith.mulf %36, %45 : vector<128x1xf32>
    %50 = vector.broadcast %49 : vector<128x1xf32> to vector<128x32xf32>
    %51 = arith.mulf %3, %50 : vector<128x32xf32>
    %52 = arith.addf %48, %51 : vector<128x32xf32>
    %53 = arith.mulf %38, %45 : vector<128x1xf32>
    %54 = vector.broadcast %53 : vector<128x1xf32> to vector<128x32xf32>
    %55 = arith.mulf %4, %54 : vector<128x32xf32>
    %56 = arith.addf %52, %55 : vector<128x32xf32>
    %57 = arith.mulf %40, %45 : vector<128x1xf32>
    %58 = vector.broadcast %57 : vector<128x1xf32> to vector<128x32xf32>
    %59 = arith.mulf %5, %58 : vector<128x32xf32>
    %60 = arith.addf %56, %59 : vector<128x32xf32>
    %c0_14 = arith.constant 0 : index
    %c0_15 = arith.constant 0 : index
    %61 = vector.load %arg7[%c0_14, %c0_15] : memref<128x32xf32, #tpu.memory_space<vmem>>, vector<128x32xf32>
    tpu.vector_store %arg7[%c0_14, %c0_15], %60 {strides = array<i32>} : memref<128x32xf32, #tpu.memory_space<vmem>>, vector<128x32xf32>,
    return
  }
  func.func @transform_0(%arg0: i32) -> (i32, i32) {
    %c0_i32 = arith.constant 0 : i32
    %c0_i32_0 = arith.constant 0 : i32
    return %arg0, %c0_i32 : i32, i32
  }
  func.func @transform_1(%arg0: i32) -> (i32, i32) {
    %c0_i32 = arith.constant 0 : i32
    %c0_i32_0 = arith.constant 0 : i32
    return %arg0, %c0_i32 : i32, i32
  }
  func.func @transform_2(%arg0: i32) -> (i32, i32) {
    %c0_i32 = arith.constant 0 : i32
    %c0_i32_0 = arith.constant 0 : i32
    return %arg0, %c0_i32 : i32, i32
  }
  func.func @transform_3(%arg0: i32) -> (i32, i32) {
    %c0_i32 = arith.constant 0 : i32
    %c0_i32_0 = arith.constant 0 : i32
    return %arg0, %c0_i32 : i32, i32
  }
  func.func @transform_4(%arg0: i32) -> (i32, i32) {
    %c0_i32 = arith.constant 0 : i32
    %c0_i32_0 = arith.constant 0 : i32
    %c0_i32_1 = arith.constant 0 : i32
    return %c0_i32, %c0_i32_0 : i32, i32
  }
  func.func @transform_5(%arg0: i32) -> i32 {
    %c0_i32 = arith.constant 0 : i32
    %c0_i32_0 = arith.constant 0 : i32
    return %c0_i32 : i32
  }
  func.func @transform_6(%arg0: i32) -> (i32, i32) {
    %c0_i32 = arith.constant 0 : i32
    %c0_i32_0 = arith.constant 0 : i32
    return %arg0, %c0_i32 : i32, i32
  }
}

</mosaic_0001>

<bundles_post_ra>
// kernel: attention_forward.1
= control target key start
LH: loop header
LB: loop body
LE: loop exit
PB: predicated region body
PF: predicated region fallthrough
CT: control target
= control target key end

     0   :  { %s1604_s23 = smov 0   ;;  %s2620_s0 = inlined_call_operand.vmem [shape: f32[256,32], index: 0, kind: input, shape index: {}]   ;;  %s2621_s1 = inlined_call_operand.vmem [shape: f32[256,32], index: 1, kind: input, shape index: {}]   ;;  %s2622_s2 = inlined_call_operand.vmem [shape: f32[256,32], index: 2, kind: input, shape index: {}]   ;;  %s2623_s3 = inlined_call_operand.vmem [shape: f32[256,32], index: 3, kind: input, shape index: {}]   ;;  %s2624_s4 = inlined_call_operand.vmem [shape: f32[1,32], index: 4, kind: input, shape index: {}]   ;;  %s2625_s5 = inlined_call_operand.<no memory space> [shape: f32[1], index: 5, kind: input, shape index: {}]   ;;  %s2626_s6 = inlined_call_operand.vmem [shape: f32[256,32], index: 6, kind: output, shape index: {}]  }
   0x1   :  { %11 = sst [smem:[#allocation2]] %s2625_s5 }
   0x2 LB: > { %s1320_s24 = sadd.s32 4294967295, %s1564_s23   ;;  %p1324_p0 = scmp.ge.s32.totalorder %s1564_s23, 1  ;;  %s1564_s23 = sphi %s1604_s23, %s17_s23  }
   0x3   : > { %p247_p1 = scmp.lt.s32.totalorder %s1564_s23, 3 }
   0x5   : > { %p248_p2 = pnand %p1324_p0, %p247_p1 }
   0x7   : > { %251 = sbr.rel (%p248_p2) target bundleno = 405 (0x195), region = 44 }
   0xe   : > { %s1325_s25 = sshll.u32 %s1320_s24, 4  ;;  %v1617_v0 = vld [vmem:[%s2624_s4] ss:$0 sm:$0xff]  ;;  %vm410_vm0 = vcmask 261120   ;;  %s323_s16 = sld [smem:[#allocation2]] }
   0xf   : > { %p293_p3 = scmp.lt.s32.totalorder %s1325_s25, 31 }
  0x11   : > { %s2725_s25 = smov (!%p293_p3, %s1325_s25), 31 }
  0x12   : > { %s1612_s26 = sshll.u32 %s2725_s25, 3 }
  0x13   : > { %s1623_s30 = scalar_lea.vmem %s2620_s0, %s1612_s26  ;;  %s1671_s9 = scalar_lea.vmem %s2621_s1, %s1612_s26 }
  0x14   : > { %v326_v1 = vld [vmem:[%s1623_s30 + $0x10] sm:$0xff]  ;;  %v324_v2 = vld [vmem:[%s1623_s30] sm:$0xff]  ;;  %v327_v3 = vld [vmem:[%s1623_s30 + $0x18] sm:$0xff]  ;;  %s1728_s12 = scalar_lea.vmem %s2622_s2, %s1612_s26  ;;  %s1797_s15 = scalar_lea.vmem %s2623_s3, %s1612_s26 }
  0x15   : > { %v396_v4 = vmul.f32 %v1617_v0, %v326_v1  ;;  %v394_v5 = vmul.f32 %v1617_v0, %v324_v2  ;;  %v397_v6 = vmul.f32 %v1617_v0, %v327_v3  ;;  %v325_v7 = vld [vmem:[%s1623_s30 + $0x8] sm:$0xff]  ;;  %v328_v10 = vld [vmem:[%s1623_s30 + $0x20] sm:$0xff]  ;;  %v331_v17 = vld [vmem:[%s1623_s30 + $0x38] sm:$0xff]  ;;  %s2275_s19 = scalar_lea.vmem %s2626_s6, %s1612_s26 }
  0x16   : > { %v395_v8 = vmul.f32 %v1617_v0, %v325_v7  ;;  %v329_v9 = vld [vmem:[%s1623_s30 + $0x28] sm:$0xff]  ;;  %v398_v16 = vmul.f32 %v1617_v0, %v328_v10  ;;  %v330_v18 = vld [vmem:[%s1623_s30 + $0x30] sm:$0xff]  ;;  %v401_v21 = vmul.f32 %v1617_v0, %v331_v17  ;;  %v332_v24 = vld [vmem:[%s1623_s30 + $0x40] sm:$0xff] }
  0x17   : > { %v417_v11 = vsel %vm410_vm0, %v396_v4, 0.0  ;;  %v411_v12 = vsel %vm410_vm0, %v394_v5, 0.0  ;;  %v420_v13 = vsel %vm410_vm0, %v397_v6, 0.0  ;;  %v399_v15 = vmul.f32 %v1617_v0, %v329_v9  ;;  %v333_v23 = vld [vmem:[%s1623_s30 + $0x48] sm:$0xff]  ;;  %v335_v29 = vld [vmem:[%s1623_s30 + $0x58] sm:$0xff]  ;;  %v334_v30 = vld [vmem:[%s1623_s30 + $0x50] sm:$0xff] }
  0x18   : > { %418 = vadd.xlane.f32.xlu1 %v417_v11  ;;  %412 = vadd.xlane.f32.xlu0 %v411_v12  ;;  %v414_v14 = vsel %vm410_vm0, %v395_v8, 0.0  ;;  %v423_v20 = vsel %vm410_vm0, %v398_v16, 0.0  ;;  %v400_v22 = vmul.f32 %v1617_v0, %v330_v18  ;;  %v432_v25 = vsel %vm410_vm0, %v401_v21, 0.0  ;;  %v337_v35 = vld [vmem:[%s1623_s30 + $0x68] sm:$0xff]  ;;  %v336_v36 = vld [vmem:[%s1623_s30 + $0x60] sm:$0xff]  ;;  %v339_v41 = vld [vmem:[%s1623_s30 + $0x78] sm:$0xff] }
  0x19   : > { %v426_v19 = vsel %vm410_vm0, %v399_v15, 0.0  ;;  %v403_v27 = vmul.f32 %v1617_v0, %v333_v23  ;;  %v402_v28 = vmul.f32 %v1617_v0, %v332_v24  ;;  %v405_v33 = vmul.f32 %v1617_v0, %v335_v29  ;;  %v338_v42 = vld [vmem:[%s1623_s30 + $0x70] sm:$0xff]  ;;  %v1678_v47 = vld [vmem:[%s1671_s9 + $0x8] sm:$0xff]  ;;  %v340_v48 = vld [vmem:[%s1671_s9] sm:$0xff] }
  0x1a   : > { %v429_v26 = vsel %vm410_vm0, %v400_v22, 0.0  ;;  %v404_v34 = vmul.f32 %v1617_v0, %v334_v30  ;;  %v407_v39 = vmul.f32 %v1617_v0, %v337_v35  ;;  %v406_v40 = vmul.f32 %v1617_v0, %v336_v36  ;;  %v343_v53 = vld [vmem:[%s1671_s9 + $0x18] sm:$0xff]  ;;  %v342_v54 = vld [vmem:[%s1671_s9 + $0x10] sm:$0xff]  ;;  %v345_v59 = vld [vmem:[%s1671_s9 + $0x28] sm:$0xff] }
  0x1b   : > { %v438_v31 = vsel %vm410_vm0, %v403_v27, 0.0  ;;  %v435_v32 = vsel %vm410_vm0, %v402_v28, 0.0  ;;  %v444_v37 = vsel %vm410_vm0, %v405_v33, 0.0  ;;  %v409_v45 = vmul.f32 %v1617_v0, %v339_v41  ;;  %v344_v60 = vld [vmem:[%s1671_s9 + $0x20] sm:$0xff]  ;;  %v347_v2 = vld [vmem:[%s1671_s9 + $0x38] sm:$0xff]  ;;  %v346_v3 = vld [vmem:[%s1671_s9 + $0x30] sm:$0xff] }
  0x1c   : > { %421 = vadd.xlane.f32.xlu1 %v420_v13  ;;  %415 = vadd.xlane.f32.xlu0 %v414_v14  ;;  %v441_v38 = vsel %vm410_vm0, %v404_v34, 0.0  ;;  %v450_v43 = vsel %vm410_vm0, %v407_v39, 0.0  ;;  %v447_v44 = vsel %vm410_vm0, %v406_v40, 0.0  ;;  %v408_v46 = vmul.f32 %v1617_v0, %v338_v42  ;;  %v349_v8 = vld [vmem:[%s1671_s9 + $0x48] sm:$0xff]  ;;  %v348_v9 = vld [vmem:[%s1671_s9 + $0x40] sm:$0xff]  ;;  %v351_v14 = vld [vmem:[%s1671_s9 + $0x58] sm:$0xff] }
  0x1d   : > { %v456_v49 = vsel %vm410_vm0, %v409_v45, 0.0  ;;  %v477_v51 = vmul.f32 %v1617_v0, %v1678_v47  ;;  %v476_v52 = vmul.f32 %v1617_v0, %v340_v48  ;;  %v479_v57 = vmul.f32 %v1617_v0, %v343_v53  ;;  %v350_v15 = vld [vmem:[%s1671_s9 + $0x50] sm:$0xff]  ;;  %v352_v21 = vld [vmem:[%s1671_s9 + $0x60] sm:$0xff] }
  0x1e   : > { %v453_v50 = vsel %vm410_vm0, %v408_v46, 0.0  ;;  %v478_v58 = vmul.f32 %v1617_v0, %v342_v54  ;;  %v481_v63 = vmul.f32 %v1617_v0, %v345_v59  ;;  %v480_v1 = vmul.f32 %v1617_v0, %v344_v60  ;;  %v354_v27 = vld [vmem:[%s1671_s9 + $0x70] sm:$0xff]  ;;  %v1738_v33 = vld [vmem:[%s1728_s12] sm:$0xff] }
  0x1f   : > { %v495_v55 = vsel %vm410_vm0, %v477_v51, 0.0  ;;  %v492_v56 = vsel %vm410_vm0, %v476_v52, 0.0  ;;  %v501_v61 = vsel %vm410_vm0, %v479_v57, 0.0  ;;  %v483_v6 = vmul.f32 %v1617_v0, %v347_v2  ;;  %v1750_v39 = vld [vmem:[%s1728_s12 + $0x10] sm:$0xff]  ;;  %v360_v45 = vld [vmem:[%s1728_s12 + $0x20] sm:$0xff]  ;;  %v363_v51 = vld [vmem:[%s1728_s12 + $0x38] sm:$0xff] }
  0x20   : > { %427 = vadd.xlane.f32.xlu1 %v426_v19  ;;  %424 = vadd.xlane.f32.xlu0 %v423_v20  ;;  %v498_v62 = vsel %vm410_vm0, %v478_v58, 0.0  ;;  %v507_v4 = vsel %vm410_vm0, %v481_v63, 0.0  ;;  %v504_v5 = vsel %vm410_vm0, %v480_v1, 0.0  ;;  %v482_v7 = vmul.f32 %v1617_v0, %v346_v3  ;;  %v353_v20 = vld [vmem:[%s1671_s9 + $0x68] sm:$0xff]  ;;  %2654 = vst [vmem:[#allocation4_spill] sm:$0xff] %v1750_v39  ;;  %v362_v52 = vld [vmem:[%s1728_s12 + $0x30] sm:$0xff] }
  0x21   : > { %v513_v10 = vsel %vm410_vm0, %v483_v6, 0.0  ;;  %v485_v12 = vmul.f32 %v1617_v0, %v349_v8  ;;  %v484_v13 = vmul.f32 %v1617_v0, %v348_v9  ;;  %v487_v18 = vmul.f32 %v1617_v0, %v351_v14  ;;  %v365_v57 = vld [vmem:[%s1728_s12 + $0x48] sm:$0xff]  ;;  %v364_v58 = vld [vmem:[%s1728_s12 + $0x40] sm:$0xff]  ;;  %v367_v63 = vld [vmem:[%s1728_s12 + $0x58] sm:$0xff] }
  0x22   : > { %v510_v11 = vsel %vm410_vm0, %v482_v7, 0.0  ;;  %v486_v19 = vmul.f32 %v1617_v0, %v350_v15  ;;  %v489_v24 = vmul.f32 %v1617_v0, %v353_v20  ;;  %v366_v1 = vld [vmem:[%s1728_s12 + $0x50] sm:$0xff]  ;;  %v369_v6 = vld [vmem:[%s1728_s12 + $0x68] sm:$0xff]  ;;  %v368_v7 = vld [vmem:[%s1728_s12 + $0x60] sm:$0xff] }
  0x23   : > { %v519_v16 = vsel %vm410_vm0, %v485_v12, 0.0  ;;  %v516_v17 = vsel %vm410_vm0, %v484_v13, 0.0  ;;  %v525_v22 = vsel %vm410_vm0, %v487_v18, 0.0  ;;  %v371_v12 = vld [vmem:[%s1728_s12 + $0x78] sm:$0xff]  ;;  %v370_v13 = vld [vmem:[%s1728_s12 + $0x70] sm:$0xff]  ;;  %v1804_v18 = vld [vmem:[%s1797_s15 + $0x8] sm:$0xff] }
  0x24   : > { %433 = vadd.xlane.f32.xlu1 %v432_v25  ;;  %430 = vadd.xlane.f32.xlu0 %v429_v26  ;;  %v522_v23 = vsel %vm410_vm0, %v486_v19, 0.0  ;;  %v488_v25 = vmul.f32 %v1617_v0, %v352_v21  ;;  %v355_v26 = vld [vmem:[%s1671_s9 + $0x78] sm:$0xff]  ;;  %v531_v28 = vsel %vm410_vm0, %v489_v24, 0.0  ;;  %v1807_v19 = vld [vmem:[%s1797_s15] sm:$0xff] }
  0x25   : > { %v491_v30 = vmul.f32 %v1617_v0, %v355_v26  ;;  %2656 = vst [vmem:[#allocation6_spill] sm:$0xff] %v1807_v19  ;;  %v1816_v24 = vld [vmem:[%s1797_s15 + $0x18] sm:$0xff] }
  0x26   : > { %v528_v29 = vsel %vm410_vm0, %v488_v25, 0.0  ;;  %2657 = vst [vmem:[#allocation7_spill] sm:$0xff] %v1816_v24  ;;  %v1819_v25 = vld [vmem:[%s1797_s15 + $0x10] sm:$0xff] }
  0x27   : > { %v537_v34 = vsel %vm410_vm0, %v491_v30, 0.0  ;;  %2658 = vst [vmem:[#allocation8_spill] sm:$0xff] %v1819_v25  ;;  %v1828_v30 = vld [vmem:[%s1797_s15 + $0x28] sm:$0xff] }
  0x28   : > { %439 = vadd.xlane.f32.xlu1 %v438_v31  ;;  %436 = vadd.xlane.f32.xlu0 %v435_v32  ;;  %v490_v31 = vmul.f32 %v1617_v0, %v354_v27  ;;  %v1735_v32 = vld [vmem:[%s1728_s12 + $0x8] sm:$0xff]  ;;  %2659 = vst [vmem:[#allocation9_spill] sm:$0xff] %v1828_v30 }
  0x29   : > { %v557_v36 = vmul.f32 %v1617_v0, %v1735_v32 }
  0x2a   : > { %v534_v35 = vsel %vm410_vm0, %v490_v31, 0.0  ;;  %v1831_v31 = vld [vmem:[%s1797_s15 + $0x20] sm:$0xff] }
  0x2b   : > { %v575_v40 = vsel %vm410_vm0, %v557_v36, 0.0  ;;  %2660 = vst [vmem:[#allocation10_spill] sm:$0xff] %v1831_v31  ;;  %v641_v36 = vmul.f32 %v1617_v0, %v1828_v30 }
  0x2c   : > { %445 = vadd.xlane.f32.xlu1 %v444_v37  ;;  %442 = vadd.xlane.f32.xlu0 %v441_v38  ;;  %v556_v37 = vmul.f32 %v1617_v0, %v1738_v33  ;;  %v1747_v38 = vld [vmem:[%s1728_s12 + $0x18] sm:$0xff] }
  0x2d   : > { %2653 = vst [vmem:[#allocation3_spill] sm:$0xff] %v1747_v38  ;;  %v559_v42 = vmul.f32 %v1617_v0, %v1747_v38 }
  0x2e   : > { %v572_v41 = vsel %vm410_vm0, %v556_v37, 0.0  ;;  %v640_v37 = vmul.f32 %v1617_v0, %v1831_v31 }
  0x2f   : > { %v581_v46 = vsel %vm410_vm0, %v559_v42, 0.0  ;;  %v667_v42 = vsel %vm410_vm0, %v641_v36, 0.0  ;;  %v1879_v36 = vstv %s323_s16 }
  0x30   : > { %451 = vadd.xlane.f32.xlu1 %v450_v43  ;;  %448 = vadd.xlane.f32.xlu0 %v447_v44  ;;  %v558_v43 = vmul.f32 %v1617_v0, %v1750_v39  ;;  %v1759_v44 = vld [vmem:[%s1728_s12 + $0x28] sm:$0xff] }
  0x31   : > { %2655 = vst [vmem:[#allocation5_spill] sm:$0xff] %v1759_v44 }
  0x32   : > { %v578_v48 = vsel %vm410_vm0, %v558_v43, 0.0  ;;  %v664_v43 = vsel %vm410_vm0, %v640_v37, 0.0 }
  0x34   : > { %457 = vadd.xlane.f32.xlu1 %v456_v49  ;;  %454 = vadd.xlane.f32.xlu0 %v453_v50  ;;  %v561_v49 = vmul.f32 %v1617_v0, %v1759_v44  ;;  %v560_v50 = vmul.f32 %v1617_v0, %v360_v45 }
  0x36   : > { %v587_v53 = vsel %vm410_vm0, %v561_v49, 0.0  ;;  %v584_v54 = vsel %vm410_vm0, %v560_v50, 0.0  ;;  %v380_v49 = vld [vmem:[%s1797_s15 + $0x40] sm:$0xff] }
  0x38   : > { %496 = vadd.xlane.f32.xlu1 %v495_v55  ;;  %493 = vadd.xlane.f32.xlu0 %v492_v56  ;;  %v563_v55 = vmul.f32 %v1617_v0, %v363_v51  ;;  %v562_v56 = vmul.f32 %v1617_v0, %v362_v52 }
  0x3a   : > { %v593_v59 = vsel %vm410_vm0, %v563_v55, 0.0  ;;  %v590_v60 = vsel %vm410_vm0, %v562_v56, 0.0  ;;  %v382_v55 = vld [vmem:[%s1797_s15 + $0x50] sm:$0xff] }
  0x3c   : > { %502 = vadd.xlane.f32.xlu1 %v501_v61  ;;  %499 = vadd.xlane.f32.xlu0 %v498_v62  ;;  %v565_v61 = vmul.f32 %v1617_v0, %v365_v57  ;;  %v564_v62 = vmul.f32 %v1617_v0, %v364_v58 }
  0x3e   : > { %v599_v2 = vsel %vm410_vm0, %v565_v61, 0.0  ;;  %v596_v3 = vsel %vm410_vm0, %v564_v62, 0.0  ;;  %v384_v61 = vld [vmem:[%s1797_s15 + $0x60] sm:$0xff] }
  0x40   : > { %508 = vadd.xlane.f32.xlu1 %v507_v4  ;;  %505 = vadd.xlane.f32.xlu0 %v504_v5  ;;  %v567_v4 = vmul.f32 %v1617_v0, %v367_v63  ;;  %v566_v5 = vmul.f32 %v1617_v0, %v366_v1 }
  0x42   : > { %v605_v8 = vsel %vm410_vm0, %v567_v4, 0.0  ;;  %v602_v9 = vsel %vm410_vm0, %v566_v5, 0.0  ;;  %v386_v4 = vld [vmem:[%s1797_s15 + $0x70] sm:$0xff] }
  0x44   : > { %514 = vadd.xlane.f32.xlu1 %v513_v10  ;;  %511 = vadd.xlane.f32.xlu0 %v510_v11  ;;  %v569_v10 = vmul.f32 %v1617_v0, %v369_v6  ;;  %v568_v11 = vmul.f32 %v1617_v0, %v368_v7 }
  0x46   : > { %v611_v14 = vsel %vm410_vm0, %v569_v10, 0.0  ;;  %v608_v15 = vsel %vm410_vm0, %v568_v11, 0.0 }
  0x48   : > { %520 = vadd.xlane.f32.xlu1 %v519_v16  ;;  %517 = vadd.xlane.f32.xlu0 %v516_v17  ;;  %v571_v16 = vmul.f32 %v1617_v0, %v371_v12  ;;  %v570_v17 = vmul.f32 %v1617_v0, %v370_v13 }
  0x4a   : > { %v617_v20 = vsel %vm410_vm0, %v571_v16, 0.0  ;;  %v614_v21 = vsel %vm410_vm0, %v570_v17, 0.0 }
  0x4c   : > { %526 = vadd.xlane.f32.xlu1 %v525_v22  ;;  %523 = vadd.xlane.f32.xlu0 %v522_v23  ;;  %v637_v22 = vmul.f32 %v1617_v0, %v1804_v18  ;;  %v636_v23 = vmul.f32 %v1617_v0, %v1807_v19 }
  0x4e   : > { %v655_v26 = vsel %vm410_vm0, %v637_v22, 0.0  ;;  %v652_v27 = vsel %vm410_vm0, %v636_v23, 0.0 }
  0x50   : > { %532 = vadd.xlane.f32.xlu1 %v531_v28  ;;  %529 = vadd.xlane.f32.xlu0 %v528_v29  ;;  %v639_v28 = vmul.f32 %v1617_v0, %v1816_v24  ;;  %v638_v29 = vmul.f32 %v1617_v0, %v1819_v25 }
  0x54   : > { %538 = vadd.xlane.f32.xlu1 %v537_v34  ;;  %535 = vadd.xlane.f32.xlu0 %v534_v35  ;;  %v661_v34 = vsel %vm410_vm0, %v639_v28, 0.0  ;;  %v658_v35 = vsel %vm410_vm0, %v638_v29, 0.0 }
  0x58   : > { %576 = vadd.xlane.f32.xlu1 %v575_v40  ;;  %573 = vadd.xlane.f32.xlu0 %v572_v41  ;;  %v379_v40 = vld [vmem:[%s1797_s15 + $0x38] sm:$0xff]  ;;  %v378_v41 = vld [vmem:[%s1797_s15 + $0x30] sm:$0xff] }
  0x59   : > { %v643_v45 = vmul.f32 %v1617_v0, %v379_v40 }
  0x5b   : > { %v673_v50 = vsel %vm410_vm0, %v643_v45, 0.0 }
  0x5c   : > { %582 = vadd.xlane.f32.xlu1 %v581_v46  ;;  %579 = vadd.xlane.f32.xlu0 %v578_v48  ;;  %v642_v46 = vmul.f32 %v1617_v0, %v378_v41  ;;  %v381_v48 = vld [vmem:[%s1797_s15 + $0x48] sm:$0xff] }
  0x5d   : > { %v645_v52 = vmul.f32 %v1617_v0, %v381_v48 }
  0x5e   : > { %v670_v51 = vsel %vm410_vm0, %v642_v46, 0.0 }
  0x5f   : > { %v679_v56 = vsel %vm410_vm0, %v645_v52, 0.0 }
  0x60   : > { %588 = vadd.xlane.f32.xlu1 %v587_v53  ;;  %585 = vadd.xlane.f32.xlu0 %v584_v54  ;;  %v644_v53 = vmul.f32 %v1617_v0, %v380_v49  ;;  %v383_v54 = vld [vmem:[%s1797_s15 + $0x58] sm:$0xff] }
  0x61   : > { %v647_v58 = vmul.f32 %v1617_v0, %v383_v54 }
  0x62   : > { %v676_v57 = vsel %vm410_vm0, %v644_v53, 0.0 }
  0x63   : > { %v685_v62 = vsel %vm410_vm0, %v647_v58, 0.0 }
  0x64   : > { %594 = vadd.xlane.f32.xlu1 %v593_v59  ;;  %591 = vadd.xlane.f32.xlu0 %v590_v60  ;;  %v646_v59 = vmul.f32 %v1617_v0, %v382_v55  ;;  %v385_v60 = vld [vmem:[%s1797_s15 + $0x68] sm:$0xff] }
  0x65   : > { %v649_v1 = vmul.f32 %v1617_v0, %v385_v60 }
  0x66   : > { %v682_v63 = vsel %vm410_vm0, %v646_v59, 0.0 }
  0x67   : > { %v691_v5 = vsel %vm410_vm0, %v649_v1, 0.0 }
  0x68   : > { %600 = vadd.xlane.f32.xlu1 %v599_v2  ;;  %597 = vadd.xlane.f32.xlu0 %v596_v3  ;;  %v648_v2 = vmul.f32 %v1617_v0, %v384_v61  ;;  %v387_v3 = vld [vmem:[%s1797_s15 + $0x78] sm:$0xff] }
  0x69   : > { %v651_v7 = vmul.f32 %v1617_v0, %v387_v3 }
  0x6a   : > { %v688_v6 = vsel %vm410_vm0, %v648_v2, 0.0 }
  0x6c   : > { %606 = vadd.xlane.f32.xlu1 %v605_v8  ;;  %603 = vadd.xlane.f32.xlu0 %v602_v9  ;;  %v650_v8 = vmul.f32 %v1617_v0, %v386_v4  ;;  %v697_v9 = vsel %vm410_vm0, %v651_v7, 0.0 }
  0x6e   : > { %v694_v10 = vsel %vm410_vm0, %v650_v8, 0.0 }
  0x70   : > { %612 = vadd.xlane.f32.xlu1 %v611_v14  ;;  %609 = vadd.xlane.f32.xlu0 %v608_v15 }
  0x74   : > { %618 = vadd.xlane.f32.xlu1 %v617_v20  ;;  %615 = vadd.xlane.f32.xlu0 %v614_v21 }
  0x78   : > { %656 = vadd.xlane.f32.xlu1 %v655_v26  ;;  %653 = vadd.xlane.f32.xlu0 %v652_v27 }
  0x7c   : > { %662 = vadd.xlane.f32.xlu1 %v661_v34  ;;  %659 = vadd.xlane.f32.xlu0 %v658_v35 }
  0x80   : > { %668 = vadd.xlane.f32.xlu1 %v667_v42  ;;  %665 = vadd.xlane.f32.xlu0 %v664_v43 }
  0x84   : > { %674 = vadd.xlane.f32.xlu1 %v673_v50  ;;  %671 = vadd.xlane.f32.xlu0 %v670_v51 }
  0x88   : > { %680 = vadd.xlane.f32.xlu1 %v679_v56  ;;  %677 = vadd.xlane.f32.xlu0 %v676_v57 }
  0x8c   : > { %686 = vadd.xlane.f32.xlu1 %v685_v62  ;;  %683 = vadd.xlane.f32.xlu0 %v682_v63 }
  0x90   : > { %692 = vadd.xlane.f32.xlu1 %v691_v5  ;;  %689 = vadd.xlane.f32.xlu0 %v688_v6 }
  0x94   : > { %698 = vadd.xlane.f32.xlu1 %v697_v9  ;;  %695 = vadd.xlane.f32.xlu0 %v694_v10 }
  0xa5   : > { %v419_v11 = vpop.xlane.xlu1 %418  ;;  %v1871_v12 = vpop.xlane.xlu0 %412 }
  0xa6   : > { %v1882_v41 = vadd.f32 %v1879_v36, %v419_v11 }
  0xa9   : > { %v422_v13 = vpop.xlane.xlu1 %421  ;;  %v1873_v14 = vpop.xlane.xlu0 %415 }
  0xaa   : > { %v1885_v42 = vadd.f32 %v1879_v36, %v422_v13 }
  0xad   : > { %v428_v15 = vpop.xlane.xlu1 %427  ;;  %v425_v16 = vpop.xlane.xlu0 %424 }
  0xae   : > { %v1898_v51 = vadd.f32 %v1879_v36, %v428_v15  ;;  %v1901_v52 = vadd.f32 %v1879_v36, %v425_v16 }
  0xb1   : > { %v434_v17 = vpop.xlane.xlu1 %433  ;;  %v431_v20 = vpop.xlane.xlu0 %430 }
  0xb2   : > { %v1914_v59 = vadd.f32 %v1879_v36, %v434_v17  ;;  %v1917_v60 = vadd.f32 %v1879_v36, %v431_v20 }
  0xb5   : > { %v440_v21 = vpop.xlane.xlu1 %439  ;;  %v437_v0 = vpop.xlane.xlu0 %436 }
  0xb6   : > { %v1930_v4 = vadd.f32 %v1879_v36, %v440_v21  ;;  %v1933_v5 = vadd.f32 %v1879_v36, %v437_v0 }
  0xb9   : > { %v446_v22 = vpop.xlane.xlu1 %445  ;;  %v443_v23 = vpop.xlane.xlu0 %442 }
  0xba   : > { %v1946_v13 = vadd.f32 %v1879_v36, %v446_v22  ;;  %v1949_v15 = vadd.f32 %v1879_v36, %v443_v23 }
  0xbc   : > { %2661 = vst [vmem:[#allocation11_spill] sm:$0xff] %v1946_v13  ;;  %2662 = vst [vmem:[#allocation12_spill] sm:$0xff] %v1949_v15 }
  0xbd   : > { %v452_v26 = vpop.xlane.xlu1 %451  ;;  %v449_v27 = vpop.xlane.xlu0 %448 }
  0xbe   : > { %v1962_v22 = vadd.f32 %v1879_v36, %v452_v26  ;;  %v1965_v23 = vadd.f32 %v1879_v36, %v449_v27 }
  0xc0   : > { %2665 = vst [vmem:[#allocation15_spill] sm:$0xff] %v1962_v22  ;;  %2666 = vst [vmem:[#allocation16_spill] sm:$0xff] %v1965_v23 }
  0xc1   : > { %v458_v28 = vpop.xlane.xlu1 %457  ;;  %v455_v29 = vpop.xlane.xlu0 %454 }
  0xc2   : > { %v1978_v26 = vadd.f32 %v1879_v36, %v458_v28  ;;  %v1981_v27 = vadd.f32 %v1879_v36, %v455_v29 }
  0xc4   : > { %2669 = vst [vmem:[#allocation19_spill] sm:$0xff] %v1978_v26  ;;  %2670 = vst [vmem:[#allocation20_spill] sm:$0xff] %v1981_v27 }
  0xc5   : > { %v1875_v34 = vpop.xlane.xlu1 %496  ;;  %v1877_v35 = vpop.xlane.xlu0 %493 }
  0xc9   : > { %v503_v37 = vpop.xlane.xlu1 %502  ;;  %v500_v40 = vpop.xlane.xlu0 %499 }
  0xca   : > { %v1888_v43 = vadd.f32 %v503_v37, %v1879_v36  ;;  %v1891_v45 = vadd.f32 %v500_v40, %v1879_v36 }
  0xcd   : > { %v509_v49 = vpop.xlane.xlu1 %508  ;;  %v506_v50 = vpop.xlane.xlu0 %505 }
  0xce   : > { %v1904_v53 = vadd.f32 %v509_v49, %v1879_v36  ;;  %v1907_v54 = vadd.f32 %v506_v50, %v1879_v36 }
  0xd1   : > { %v515_v57 = vpop.xlane.xlu1 %514  ;;  %v512_v58 = vpop.xlane.xlu0 %511 }
  0xd2   : > { %v1920_v61 = vadd.f32 %v515_v57, %v1879_v36  ;;  %v1923_v62 = vadd.f32 %v512_v58, %v1879_v36 }
  0xd5   : > { %v521_v2 = vpop.xlane.xlu1 %520  ;;  %v518_v3 = vpop.xlane.xlu0 %517 }
  0xd6   : > { %v1936_v6 = vadd.f32 %v521_v2, %v1879_v36  ;;  %v1939_v7 = vadd.f32 %v518_v3, %v1879_v36 }
  0xd8   : > { %v724_v9 = vmax.f32 %v1933_v5, %v1939_v7 }
  0xd9   : > { %v527_v10 = vpop.xlane.xlu1 %526  ;;  %v524_v11 = vpop.xlane.xlu0 %523 }
  0xda   : > { %v1952_v16 = vadd.f32 %v527_v10, %v1879_v36  ;;  %v1955_v17 = vadd.f32 %v524_v11, %v1879_v36 }
  0xdc   : > { %2663 = vst [vmem:[#allocation13_spill] sm:$0xff] %v1952_v16  ;;  %2664 = vst [vmem:[#allocation14_spill] sm:$0xff] %v1955_v17  ;;  %v727_v20 = vmax.f32 %v1946_v13, %v1952_v16  ;;  %v726_v21 = vmax.f32 %v1949_v15, %v1955_v17 }
  0xdd   : > { %v533_v0 = vpop.xlane.xlu1 %532  ;;  %v530_v37 = vpop.xlane.xlu0 %529 }
  0xde   : > { %v1968_v40 = vadd.f32 %v533_v0, %v1879_v36  ;;  %v1971_v49 = vadd.f32 %v530_v37, %v1879_v36 }
  0xe0   : > { %2667 = vst [vmem:[#allocation17_spill] sm:$0xff] %v1968_v40  ;;  %2668 = vst [vmem:[#allocation18_spill] sm:$0xff] %v1971_v49  ;;  %v729_v50 = vmax.f32 %v1962_v22, %v1968_v40  ;;  %v728_v57 = vmax.f32 %v1965_v23, %v1971_v49 }
  0xe1   : > { %v539_v58 = vpop.xlane.xlu1 %538  ;;  %v536_v2 = vpop.xlane.xlu0 %535 }
  0xe2   : > { %v1984_v3 = vadd.f32 %v539_v58, %v1879_v36  ;;  %v1987_v10 = vadd.f32 %v536_v2, %v1879_v36 }
  0xe4   : > { %2671 = vst [vmem:[#allocation21_spill] sm:$0xff] %v1984_v3  ;;  %2672 = vst [vmem:[#allocation22_spill] sm:$0xff] %v1987_v10  ;;  %v731_v11 = vmax.f32 %v1978_v26, %v1984_v3  ;;  %v730_v0 = vmax.f32 %v1981_v27, %v1987_v10 }
  0xe5   : > { %v577_v37 = vpop.xlane.xlu1 %576  ;;  %v574_v8 = vpop.xlane.xlu0 %573 }
  0xe6   : > { %v621_v17 = vadd.f32 %v577_v37, %v1879_v36 }
  0xe9   : > { %v583_v1 = vpop.xlane.xlu1 %582  ;;  %v580_v28 = vpop.xlane.xlu0 %579 }
  0xed   : > { %v589_v63 = vpop.xlane.xlu1 %588  ;;  %v586_v56 = vpop.xlane.xlu0 %585 }
  0xf1   : > { %v595_v29 = vpop.xlane.xlu1 %594  ;;  %v592_v55 = vpop.xlane.xlu0 %591 }
  0xf5   : > { %v1993_v48 = vpop.xlane.xlu1 %600  ;;  %v598_v58 = vpop.xlane.xlu0 %597 }
  0xf6   : > { %v1996_v2 = vadd.f32 %v598_v58, %v1879_v36 }
  0xf8   : > { %v1999_v46 = vmax.f32 %v724_v9, %v1996_v2 }
  0xf9   : > { %v607_v3 = vpop.xlane.xlu1 %606  ;;  %v604_v26 = vpop.xlane.xlu0 %603 }
  0xfa   : > { %v2002_v10 = vadd.f32 %v607_v3, %v1879_v36  ;;  %v2005_v27 = vadd.f32 %v604_v26, %v1879_v36  ;;  %v541_v3 = vadd.f32 %v1875_v34, %v1879_v36  ;;  %v540_v26 = vadd.f32 %v1877_v35, %v1879_v36 }
  0xfb   : > { %v620_v34 = vadd.f32 %v574_v8, %v1879_v36  ;;  %v2054_v8 = vadd.f32 %v589_v63, %v1879_v36  ;;  %v2686_v63 = vmax.f32 %v1882_v41, %v1891_v45 }
  0xfc   : > { %2673 = vst [vmem:[#allocation23_spill] sm:$0xff] %v2002_v10  ;;  %2674 = vst [vmem:[#allocation24_spill] sm:$0xff] %v2005_v27  ;;  %v2008_v49 = vmax.f32 %v727_v20, %v2002_v10  ;;  %v2011_v23 = vmax.f32 %v726_v21, %v2005_v27  ;;  %v460_v27 = vadd.f32 %v1879_v36, %v1871_v12 }
  0xfd   : > { %v613_v40 = vpop.xlane.xlu1 %612  ;;  %v610_v58 = vpop.xlane.xlu0 %609  ;;  %v2045_v12 = vadd.f32 %v580_v28, %v1879_v36 }
  0xfe   : > { %2675 = vst [vmem:[#allocation25_spill] sm:$0xff] %v2008_v49  ;;  %2676 = vst [vmem:[#allocation26_spill] sm:$0xff] %v2011_v23  ;;  %v2014_v22 = vadd.f32 %v613_v40, %v1879_v36  ;;  %v2017_v9 = vadd.f32 %v610_v58, %v1879_v36  ;;  %v461_v40 = vadd.f32 %v1879_v36, %v1873_v14 }
 0x100   : > { %2677 = vst [vmem:[#allocation27_spill] sm:$0xff] %v2014_v22  ;;  %2678 = vst [vmem:[#allocation28_spill] sm:$0xff] %v2017_v9  ;;  %v2024_v20 = vmax.f32 %v729_v50, %v2014_v22  ;;  %v2027_v21 = vmax.f32 %v728_v57, %v2017_v9  ;;  %v717_v57 = vmax.f32 %v461_v40, %v541_v3 }
 0x101   : > { %v619_v58 = vpop.xlane.xlu1 %618  ;;  %v616_v31 = vpop.xlane.xlu0 %615  ;;  %v716_v9 = vmax.f32 %v460_v27, %v540_v26  ;;  %v2042_v22 = vadd.f32 %v583_v1, %v1879_v36 }
 0x102   : > { %2679 = vst [vmem:[#allocation29_spill] sm:$0xff] %v2024_v20  ;;  %2680 = vst [vmem:[#allocation30_spill] sm:$0xff] %v2027_v21  ;;  %v2036_v35 = vadd.f32 %v619_v58, %v1879_v36  ;;  %v2039_v50 = vadd.f32 %v616_v31, %v1879_v36  ;;  %v2057_v31 = vadd.f32 %v586_v56, %v1879_v36 }
 0x103   : > { %v733_v20 = vmax.f32 %v717_v57, %v621_v17  ;;  %v732_v1 = vmax.f32 %v716_v9, %v620_v34  ;;  %v2687_v9 = vmax.f32 %v1898_v51, %v1904_v53 }
 0x104   : > { %2681 = vst [vmem:[#allocation31_spill] sm:$0xff] %v2036_v35  ;;  %2682 = vst [vmem:[#allocation32_spill] sm:$0xff] %v2039_v50  ;;  %v2048_v14 = vmax.f32 %v731_v11, %v2036_v35  ;;  %v2051_v37 = vmax.f32 %v730_v0, %v2039_v50  ;;  %v2685_v11 = vmax.f32 %v1885_v42, %v1888_v43 }
 0x105   : > { %v657_v58 = vpop.xlane.xlu1 %656  ;;  %v654_v21 = vpop.xlane.xlu0 %653  ;;  %v734_v50 = vmax.f32 %v2686_v63, %v2045_v12  ;;  %v737_v57 = vmax.f32 %v2687_v9, %v2054_v8  ;;  %v2078_v35 = vadd.f32 %v595_v29, %v1879_v36 }
 0x106   : > { %2683 = vst [vmem:[#allocation33_spill] sm:$0xff] %v2048_v14  ;;  %2684 = vst [vmem:[#allocation34_spill] sm:$0xff] %v2051_v37  ;;  %v701_v15 = vadd.f32 %v657_v58, %v1879_v36  ;;  %v700_v28 = vadd.f32 %v654_v21, %v1879_v36  ;;  %v735_v0 = vmax.f32 %v2685_v11, %v2042_v22 }
 0x107   : > { %v2688_v21 = vmax.f32 %v1901_v52, %v1907_v54  ;;  %v2081_v11 = vadd.f32 %v592_v55, %v1879_v36 }
 0x108   : > { %v749_v56 = vmax.f32 %v733_v20, %v701_v15  ;;  %v748_v37 = vmax.f32 %v732_v1, %v700_v28 }
 0x109   : > { %v736_v58 = vmax.f32 %v2688_v21, %v2057_v31  ;;  %v663_v14 = vpop.xlane.xlu1 %662  ;;  %v660_v63 = vpop.xlane.xlu0 %659 }
 0x10a   : > { %v765_v20 = vsub.f32 %v461_v40, %v749_v56  ;;  %v813_v1 = vsub.f32 %v541_v3, %v749_v56  ;;  %v861_v23 = vsub.f32 %v621_v17, %v749_v56  ;;  %v909_v30 = vsub.f32 %v701_v15, %v749_v56 }
 0x10b   : > { %v764_v10 = vsub.f32 %v460_v27, %v748_v37  ;;  %v812_v16 = vsub.f32 %v540_v26, %v748_v37  ;;  %v860_v9 = vsub.f32 %v620_v34, %v748_v37  ;;  %v908_v44 = vsub.f32 %v700_v28, %v748_v37 }
 0x10c   : > { %v782_v25 = vmul.f32 1.442695, %v765_v20  ;;  %v830_v13 = vmul.f32 1.442695, %v813_v1  ;;  %v878_v39 = vmul.f32 1.442695, %v861_v23  ;;  %v703_v21 = vadd.f32 %v663_v14, %v1879_v36 }
 0x10d   : > { %v926_v29 = vmul.f32 1.442695, %v909_v30  ;;  %v780_v49 = vmul.f32 1.442695, %v764_v10  ;;  %v828_v24 = vmul.f32 1.442695, %v812_v16  ;;  %v702_v55 = vadd.f32 %v660_v63, %v1879_v36  ;;  %v669_v38 = vpop.xlane.xlu1 %668  ;;  %v666_v19 = vpop.xlane.xlu0 %665 }
 0x10e   : > { %1346 = vpow2.f32 %v782_v25  ;;  %v876_v3 = vmul.f32 1.442695, %v860_v9  ;;  %v924_v17 = vmul.f32 1.442695, %v908_v44  ;;  %v751_v15 = vmax.f32 %v735_v0, %v703_v21 }
 0x10f   : > { %1348 = vpow2.f32 %v830_v13  ;;  %v750_v27 = vmax.f32 %v734_v50, %v702_v55  ;;  %v2086_v26 = vadd.f32 %v669_v38, %v1879_v36  ;;  %v2089_v23 = vadd.f32 %v666_v19, %v1879_v36 }
 0x110   : > { %1350 = vpow2.f32 %v878_v39  ;;  %v767_v30 = vsub.f32 %v1885_v42, %v751_v15  ;;  %v815_v16 = vsub.f32 %v1888_v43, %v751_v15  ;;  %v863_v10 = vsub.f32 %v2042_v22, %v751_v15 }
 0x111   : > { %1352 = vpow2.f32 %v926_v29  ;;  %v911_v25 = vsub.f32 %v703_v21, %v751_v15  ;;  %v766_v44 = vsub.f32 %v1882_v41, %v750_v27  ;;  %v814_v13 = vsub.f32 %v1891_v45, %v750_v27  ;;  %v675_v45 = vpop.xlane.xlu1 %674  ;;  %v672_v37 = vpop.xlane.xlu0 %671 }
 0x112   : > { %v2689_v38 = vmax.f32 %v1914_v59, %v1920_v61  ;;  %v2690_v39 = vmax.f32 %v1917_v60, %v1923_v62  ;;  %1354 = vpow2.f32 %v780_v49  ;;  %v786_v42 = vmul.f32 1.442695, %v767_v30 }
 0x113   : > { %v2106_v43 = vadd.f32 %v1993_v48, %v1879_v36  ;;  %1356 = vpow2.f32 %v828_v24  ;;  %v834_v41 = vmul.f32 1.442695, %v815_v16  ;;  %v882_v22 = vmul.f32 1.442695, %v863_v10 }
 0x114   : > { %v739_v40 = vmax.f32 %v2689_v38, %v2078_v35  ;;  %v738_v19 = vmax.f32 %v2690_v39, %v2081_v11  ;;  %1358 = vpow2.f32 %v876_v3  ;;  %v930_v34 = vmul.f32 1.442695, %v911_v25 }
 0x115   : > { %v862_v50 = vsub.f32 %v2045_v12, %v750_v27  ;;  %v753_v14 = vmax.f32 %v737_v57, %v2086_v26  ;;  %1360 = vpow2.f32 %v924_v17  ;;  %v784_v28 = vmul.f32 1.442695, %v766_v44  ;;  %v681_v44 = vpop.xlane.xlu1 %680 }
 0x116   : > { %v910_v0 = vsub.f32 %v702_v55, %v750_v27  ;;  %v752_v49 = vmax.f32 %v736_v58, %v2089_v23  ;;  %1362 = vpow2.f32 %v786_v42  ;;  %v832_v56 = vmul.f32 1.442695, %v814_v13 }
 0x117   : > { %v769_v48 = vsub.f32 %v1898_v51, %v753_v14  ;;  %v2113_v24 = vadd.f32 %v675_v45, %v1879_v36  ;;  %1364 = vpow2.f32 %v834_v41  ;;  %v817_v63 = vsub.f32 %v1904_v53, %v753_v14 }
 0x118   : > { %v865_v12 = vsub.f32 %v2054_v8, %v753_v14  ;;  %v2118_v57 = vadd.f32 %v672_v37, %v1879_v36  ;;  %v2120_v20 = vpop.eup %1346  ;;  %1366 = vpow2.f32 %v882_v22  ;;  %v880_v1 = vmul.f32 1.442695, %v862_v50 }
 0x119   : > { %v768_v58 = vsub.f32 %v1901_v52, %v752_v49  ;;  %v816_v9 = vsub.f32 %v1907_v54, %v752_v49  ;;  %v2124_v51 = vpop.eup %1348  ;;  %v2691_v21 = vmax.f32 %v1930_v4, %v1936_v6  ;;  %1368 = vpow2.f32 %v930_v34 }
 0x11a   : > { %v928_v8 = vmul.f32 1.442695, %v910_v0  ;;  %v913_v29 = vsub.f32 %v2086_v26, %v753_v14  ;;  %v2131_v55 = vpop.eup %1350  ;;  %v957_v3 = vadd.f32 %v2124_v51, %v2120_v20  ;;  %1370 = vpow2.f32 %v784_v28 }
 0x11b   : > { %v741_v53 = vmax.f32 %v2691_v21, %v2106_v43  ;;  %v790_v52 = vmul.f32 1.442695, %v769_v48  ;;  %v838_v17 = vmul.f32 1.442695, %v817_v63  ;;  %v2135_v54 = vpop.eup %1352  ;;  %1372 = vpow2.f32 %v832_v56  ;;  %v678_v56 = vpop.xlane.xlu0 %677 }
 0x11c   : > { %v886_v15 = vmul.f32 1.442695, %v865_v12  ;;  %v864_v27 = vsub.f32 %v2057_v31, %v752_v49  ;;  %v755_v30 = vmax.f32 %v739_v40, %v2113_v24  ;;  %v2139_v16 = vpop.eup %1354  ;;  %v973_v26 = vadd.f32 %v2131_v55, %v957_v3 }
 0x11d   : > { %1374 = vpow2.f32 %v880_v1  ;;  %v912_v10 = vsub.f32 %v2089_v23, %v752_v49  ;;  %v754_v25 = vmax.f32 %v738_v19, %v2118_v57  ;;  %v2144_v13 = vpop.eup %1356  ;;  %v934_v38 = vmul.f32 1.442695, %v913_v29 }
 0x11e   : > { %1376 = vpow2.f32 %v928_v8  ;;  %v788_v39 = vmul.f32 1.442695, %v768_v58  ;;  %v771_v42 = vsub.f32 %v1914_v59, %v755_v30  ;;  %v2147_v31 = vpop.eup %1358  ;;  %v989_v40 = vadd.f32 %v2135_v54, %v973_v26 }
 0x11f   : > { %v956_v41 = vadd.f32 %v2144_v13, %v2139_v16  ;;  %1378 = vpow2.f32 %v790_v52  ;;  %v819_v23 = vsub.f32 %v1920_v61, %v755_v30  ;;  %v2153_v22 = vpop.eup %1360  ;;  %v836_v19 = vmul.f32 1.442695, %v816_v9 }
 0x120   : > { %1380 = vpow2.f32 %v838_v17  ;;  %v884_v45 = vmul.f32 1.442695, %v864_v27  ;;  %v2156_v34 = vadd.f32 %v681_v44, %v1879_v36  ;;  %v2158_v50 = vpop.eup %1362  ;;  %v932_v14 = vmul.f32 1.442695, %v912_v10  ;;  %v687_v27 = vpop.xlane.xlu1 %686 }
 0x121   : > { %1382 = vrcp.f32 %v989_v40  ;;  %v972_v59 = vadd.f32 %v2147_v31, %v956_v41  ;;  %v770_v37 = vsub.f32 %v1917_v60, %v754_v25  ;;  %v2162_v28 = vpop.eup %1364  ;;  %v867_v61 = vsub.f32 %v2078_v35, %v755_v30 }
 0x122   : > { %1384 = vpow2.f32 %v886_v15  ;;  %v915_v0 = vsub.f32 %v2113_v24, %v755_v30  ;;  %v818_v49 = vsub.f32 %v1923_v62, %v754_v25  ;;  %v2167_v48 = vpop.eup %1366  ;;  %v959_v12 = vadd.f32 %v2162_v28, %v2158_v50 }
 0x123   : > { %v988_v63 = vadd.f32 %v2153_v22, %v972_v59  ;;  %1386 = vpow2.f32 %v934_v38  ;;  %v794_v1 = vmul.f32 1.442695, %v771_v42  ;;  %v2172_v60 = vpop.eup %1368  ;;  %v842_v58 = vmul.f32 1.442695, %v819_v23 }
 0x124   : > { %1388 = vpow2.f32 %v788_v39  ;;  %v866_v35 = vsub.f32 %v2081_v11, %v754_v25  ;;  %v914_v24 = vsub.f32 %v2118_v57, %v754_v25  ;;  %v2176_v9 = vpop.eup %1370  ;;  %v975_v62 = vadd.f32 %v2167_v48, %v959_v12  ;;  %v1506_v12 = vld [vmem:[%s1623_s30 + $0x8] sm:$0xff] }
 0x125   : > { %1390 = vrcp.f32 %v988_v63  ;;  %v2180_v21 = vmax.f32 %v741_v53, %v2156_v34  ;;  %v2183_v8 = vadd.f32 %v678_v56, %v1879_v36  ;;  %v2185_v29 = vpop.eup %1372  ;;  %v890_v3 = vmul.f32 1.442695, %v867_v61 }
 0x126   : > { %1392 = vpow2.f32 %v836_v19  ;;  %v2187_v52 = vmul.f32 1.442695, %v915_v0  ;;  %v2189_v11 = vmul.f32 1.442695, %v770_v37  ;;  %v991_v17 = vadd.f32 %v2172_v60, %v975_v62 }
 0x127   : > { %v2191_v57 = vpop.eup %1374  ;;  %v958_v15 = vadd.f32 %v2185_v29, %v2176_v9  ;;  %1394 = vpow2.f32 %v884_v45  ;;  %v773_v53 = vsub.f32 %v1930_v4, %v2180_v21  ;;  %v2200_v26 = vmul.f32 1.442695, %v818_v49 }
 0x128   : > { %v2198_v30 = vpop.eup %1376  ;;  %1396 = vpow2.f32 %v932_v14  ;;  %v2202_v10 = vmul.f32 1.442695, %v866_v35  ;;  %v821_v25 = vsub.f32 %v1936_v6, %v2180_v21  ;;  %v2209_v39 = vmul.f32 1.442695, %v914_v24 }
 0x129   : > { %v2206_v44 = vpop.eup %1378  ;;  %1398 = vrcp.f32 %v991_v17  ;;  %v974_v38 = vadd.f32 %v2191_v57, %v958_v15  ;;  %v2213_v4 = vmax.f32 %v1999_v46, %v2183_v8  ;;  %v869_v40 = vsub.f32 %v2106_v43, %v2180_v21 }
 0x12a   : > { %v2215_v42 = vpop.eup %1380  ;;  %1400 = vpow2.f32 %v794_v1  ;;  %v917_v6 = vsub.f32 %v2156_v34, %v2180_v21  ;;  %v2222_v41 = vadd.f32 %v687_v27, %v1879_v36  ;;  %v2234_v37 = vmul.f32 1.442695, %v773_v53 }
 0x12b   : > { %v1383_v23 = vpop.eup %1382  ;;  %v990_v19 = vadd.f32 %v2198_v30, %v974_v38  ;;  %v961_v46 = vadd.f32 %v2215_v42, %v2206_v44  ;;  %1402 = vpow2.f32 %v842_v58  ;;  %v772_v45 = vsub.f32 %v1933_v5, %v2213_v4 }
 0x12c   : > { %v2229_v59 = vpop.eup %1384  ;;  %v1037_v43 = vmul.f32 %v1383_v23, %v2120_v20  ;;  %v1069_v34 = vmul.f32 %v1383_v23, %v2124_v51  ;;  %v1117_v14 = vmul.f32 %v1383_v23, %v2131_v55  ;;  %v2239_v49 = vmul.f32 1.442695, %v821_v25 }
 0x12d   : > { %v2236_v61 = vpop.eup %1386  ;;  %1404 = vrcp.f32 %v990_v19  ;;  %v977_v0 = vadd.f32 %v2229_v59, %v961_v46  ;;  %v820_v56 = vsub.f32 %v1939_v7, %v2213_v4  ;;  %v1165_v55 = vmul.f32 %v1383_v23, %v2135_v54 }
 0x12e   : > { %v2243_v63 = vpop.eup %1388  ;;  %v1053_v20 = vmul.f32 %v1506_v12, %v1037_v43  ;;  %v1085_v51 = vmul.f32 %v1069_v34, %v1678_v47  ;;  %v2248_v1 = vmul.f32 1.442695, %v869_v40  ;;  %v1133_v35 = vmul.f32 %v1117_v14, %v1735_v32  ;;  %v1507_v40 = vld [vmem:[%s1623_s30] sm:$0xff] }
 0x12f   : > { %v1391_v58 = vpop.eup %1390  ;;  %v993_v24 = vadd.f32 %v2236_v61, %v977_v0  ;;  %1406 = vpow2.f32 %v890_v3  ;;  %v868_v62 = vsub.f32 %v1996_v2, %v2213_v4  ;;  %v2264_v27 = vmul.f32 1.442695, %v917_v6  ;;  %v2692_v6 = vld [vmem:[#allocation6_spill] sm:$0xff] }
 0x130   : > { %v2254_v21 = vpop.eup %1392  ;;  %v1101_v17 = vadd.f32 %v1085_v51, %v1053_v20  ;;  %v1036_v47 = vmul.f32 %v1391_v58, %v2139_v16  ;;  %v1068_v54 = vmul.f32 %v1391_v58, %v2144_v13  ;;  %v1116_v15 = vmul.f32 %v1391_v58, %v2147_v31  ;;  %v1508_v13 = vld [vmem:[%s1671_s9] sm:$0xff] }
 0x131   : > { %v2259_v53 = vpop.eup %1394  ;;  %v1164_v32 = vmul.f32 %v1391_v58, %v2153_v22  ;;  %1408 = vrcp.f32 %v993_v24  ;;  %v960_v3 = vadd.f32 %v2254_v21, %v2243_v63  ;;  %v1181_v16 = vmul.f32 %v1165_v55, %v1804_v18  ;;  %v1509_v58 = vld [vmem:[%s1623_s30 + $0x18] sm:$0xff] }
 0x132   : > { %v2266_v25 = vpop.eup %1396  ;;  %v1149_v38 = vadd.f32 %v1133_v35, %v1101_v17  ;;  %v1052_v23 = vmul.f32 %v1507_v40, %v1036_v47  ;;  %v1084_v19 = vmul.f32 %v1508_v13, %v1068_v54  ;;  %v1132_v22 = vmul.f32 %v1116_v15, %v1738_v33  ;;  %v1510_v24 = vld [vmem:[%s1671_s9 + $0x18] sm:$0xff]  ;;  %v2693_v47 = vld [vmem:[#allocation3_spill] sm:$0xff]  ;;  %v2695_v13 = vld [vmem:[#allocation25_spill] sm:$0xff] }
 0x133   : > { %v1399_v31 = vpop.eup %1398  ;;  %v1180_v46 = vmul.f32 %v1164_v32, %v2692_v6  ;;  %v976_v43 = vadd.f32 %v2259_v53, %v960_v3  ;;  %1410 = vpow2.f32 %v2187_v52 }
 0x134   : > { %v2281_v18 = vpop.eup %1400  ;;  %v1197_v34 = vadd.f32 %v1181_v16, %v1149_v38  ;;  %v1100_v14 = vadd.f32 %v1084_v19, %v1052_v23  ;;  %v1039_v0 = vmul.f32 %v1399_v31, %v2158_v50  ;;  %v1071_v12 = vmul.f32 %v1399_v31, %v2162_v28 }
 0x135   : > { %v2285_v20 = vpop.eup %1402  ;;  %v1119_v33 = vmul.f32 %v1399_v31, %v2167_v48  ;;  %v1167_v51 = vmul.f32 %v1399_v31, %v2172_v60  ;;  %v992_v55 = vadd.f32 %v2266_v25, %v976_v43  ;;  %1412 = vpow2.f32 %v2189_v11  ;;  %v2694_v60 = vld [vmem:[#allocation7_spill] sm:$0xff] }
 0x136   : > { %1213 = vst.msk [vmem:[%s2275_s19 + $0x8] sm:$0xff] %vm410_vm0, %v1197_v34  ;;  %v1148_v52 = vadd.f32 %v1132_v22, %v1100_v14  ;;  %v1055_v35 = vmul.f32 %v1509_v58, %v1039_v0  ;;  %v1087_v17 = vmul.f32 %v1510_v24, %v1071_v12  ;;  %v963_v50 = vadd.f32 %v2285_v20, %v2281_v18 }
 0x137   : > { %v1405_v28 = vpop.eup %1404  ;;  %v1135_v48 = vmul.f32 %v1119_v33, %v2693_v47  ;;  %v1183_v54 = vmul.f32 %v1167_v51, %v2694_v60  ;;  %1414 = vrcp.f32 %v992_v55  ;;  %v2302_v11 = vmul.f32 1.442695, %v772_v45  ;;  %v1511_v45 = vld [vmem:[%s1623_s30 + $0x10] sm:$0xff]  ;;  %v2698_v51 = vld [vmem:[#allocation8_spill] sm:$0xff]  ;;  %v2701_v60 = vld [vmem:[#allocation23_spill] sm:$0xff] }
 0x138   : > { %v1196_v15 = vadd.f32 %v1180_v46, %v1148_v52  ;;  %v1103_v32 = vadd.f32 %v1087_v17, %v1055_v35  ;;  %v1038_v3 = vmul.f32 %v1405_v28, %v2176_v9  ;;  %v1070_v38 = vmul.f32 %v1405_v28, %v2185_v29  ;;  %v1512_v9 = vld [vmem:[%s1671_s9 + $0x10] sm:$0xff]  ;;  %v2697_v46 = vld [vmem:[#allocation11_spill] sm:$0xff]  ;;  %v1513_v52 = vld [vmem:[%s1623_s30 + $0x28] sm:$0xff] }
 0x139   : > { %v2306_v16 = vpop.eup %1406  ;;  %v1118_v40 = vmul.f32 %v1405_v28, %v2191_v57  ;;  %v1166_v23 = vmul.f32 %v1405_v28, %v2198_v30  ;;  %1416 = vpow2.f32 %v2200_v26  ;;  %v2313_v19 = vmax.f32 %v2695_v13, %v2222_v41  ;;  %v2696_v57 = vld [vmem:[#allocation4_spill] sm:$0xff] }
 0x13a   : > { %1212 = vst.msk [vmem:[%s2275_s19] sm:$0xff] %vm410_vm0, %v1196_v15  ;;  %v1151_v5 = vadd.f32 %v1135_v48, %v1103_v32  ;;  %v1054_v31 = vmul.f32 %v1511_v45, %v1038_v3  ;;  %v1086_v22 = vmul.f32 %v1512_v9, %v1070_v38  ;;  %v979_v29 = vadd.f32 %v2306_v16, %v963_v50  ;;  %v1514_v35 = vld [vmem:[%s1671_s9 + $0x28] sm:$0xff]  ;;  %v2699_v50 = vld [vmem:[#allocation5_spill] sm:$0xff]  ;;  %v1515_v45 = vld [vmem:[%s1623_s30 + $0x20] sm:$0xff] }
 0x13b   : > { %v1409_v6 = vpop.eup %1408  ;;  %v1134_v30 = vmul.f32 %v1118_v40, %v2696_v57  ;;  %1418 = vpow2.f32 %v2202_v10  ;;  %v2325_v26 = vmul.f32 1.442695, %v820_v56  ;;  %v775_v43 = vsub.f32 %v2697_v46, %v2313_v19  ;;  %v2702_v32 = vld [vmem:[#allocation9_spill] sm:$0xff]  ;;  %v1516_v9 = vld [vmem:[%s1671_s9 + $0x20] sm:$0xff] }
 0x13c   : > { %v1199_v34 = vadd.f32 %v1183_v54, %v1151_v5  ;;  %v1102_v14 = vadd.f32 %v1086_v22, %v1054_v31  ;;  %v1041_v0 = vmul.f32 %v1409_v6, %v2206_v44  ;;  %v1073_v12 = vmul.f32 %v1409_v6, %v2215_v42  ;;  %v684_v42 = vpop.xlane.xlu0 %683 }
 0x13d   : > { %v2331_v33 = vpop.eup %1410  ;;  %v1182_v55 = vmul.f32 %v1166_v23, %v2698_v51  ;;  %v1121_v10 = vmul.f32 %v1409_v6, %v2229_v59  ;;  %v1169_v7 = vmul.f32 %v1409_v6, %v2236_v61  ;;  %1420 = vpow2.f32 %v2209_v39  ;;  %v2700_v59 = vld [vmem:[#allocation13_spill] sm:$0xff]  ;;  %v693_v6 = vpop.xlane.xlu1 %692 }
 0x13e   : > { %1215 = vst.msk [vmem:[%s2275_s19 + $0x18] sm:$0xff] %vm410_vm0, %v1199_v34  ;;  %v1150_v56 = vadd.f32 %v1134_v30, %v1102_v14  ;;  %v1057_v58 = vmul.f32 %v1513_v52, %v1041_v0  ;;  %v1089_v24 = vmul.f32 %v1514_v35, %v1073_v12  ;;  %v995_v44 = vadd.f32 %v2331_v33, %v979_v29  ;;  %v1517_v30 = vld [vmem:[%s1728_s12 + $0x20] sm:$0xff]  ;;  %v2705_v0 = vld [vmem:[#allocation14_spill] sm:$0xff] }
 0x13f   : > { %v2342_v17 = vpop.eup %1412  ;;  %v1137_v28 = vmul.f32 %v1121_v10, %v2699_v50  ;;  %1422 = vpow2.f32 %v2234_v37  ;;  %v916_v39 = vsub.f32 %v2183_v8, %v2213_v4  ;;  %v823_v61 = vsub.f32 %v2700_v59, %v2313_v19 }
 0x140   : > { %v1198_v47 = vadd.f32 %v1182_v55, %v1150_v56  ;;  %v1105_v48 = vadd.f32 %v1089_v24, %v1057_v58  ;;  %1424 = vrcp.f32 %v995_v44  ;;  %v871_v54 = vsub.f32 %v2701_v60, %v2313_v19  ;;  %v690_v34 = vpop.xlane.xlu0 %689  ;;  %v2706_v55 = vld [vmem:[#allocation10_spill] sm:$0xff] }
 0x141   : > { %v1415_v15 = vpop.eup %1414  ;;  %v1185_v3 = vmul.f32 %v1169_v7, %v2702_v32  ;;  %1426 = vpow2.f32 %v2239_v49  ;;  %v892_v8 = vmul.f32 1.442695, %v868_v62  ;;  %v2358_v37 = vadd.f32 %v684_v42, %v1879_v36  ;;  %v2707_v7 = vld [vmem:[#allocation24_spill] sm:$0xff] }
 0x142   : > { %1214 = vst.msk [vmem:[%s2275_s19 + $0x10] sm:$0xff] %vm410_vm0, %v1198_v47  ;;  %v1153_v38 = vadd.f32 %v1137_v28, %v1105_v48  ;;  %v1040_v40 = vmul.f32 %v1415_v15, %v2243_v63  ;;  %v1072_v23 = vmul.f32 %v1415_v15, %v2254_v21  ;;  %v1120_v13 = vmul.f32 %v1415_v15, %v2259_v53 }
 0x143   : > { %v2365_v5 = vpop.eup %1416  ;;  %v1168_v49 = vmul.f32 %v1415_v15, %v2266_v25  ;;  %1428 = vpow2.f32 %v2248_v1  ;;  %v940_v2 = vmul.f32 1.442695, %v916_v39  ;;  %v802_v4 = vmul.f32 1.442695, %v775_v43  ;;  %v2703_v1 = vld [vmem:[#allocation26_spill] sm:$0xff] }
 0x144   : > { %v1201_v62 = vadd.f32 %v1185_v3, %v1153_v38  ;;  %v1056_v31 = vmul.f32 %v1515_v45, %v1040_v40  ;;  %v1088_v22 = vmul.f32 %v1516_v9, %v1072_v23  ;;  %v850_v63 = vmul.f32 1.442695, %v823_v61  ;;  %v2710_v38 = vld [vmem:[#allocation15_spill] sm:$0xff]  ;;  %v2711_v23 = vld [vmem:[#allocation17_spill] sm:$0xff] }
 0x145   : > { %v2371_v29 = vpop.eup %1418  ;;  %v962_v21 = vadd.f32 %v2365_v5, %v2342_v17  ;;  %1430 = vpow2.f32 %v2264_v27  ;;  %v919_v53 = vsub.f32 %v2222_v41, %v2313_v19  ;;  %v758_v25 = vmax.f32 %v2703_v1, %v2358_v37  ;;  %v2704_v41 = vld [vmem:[#allocation12_spill] sm:$0xff] }
 0x146   : > { %1217 = vst.msk [vmem:[%s2275_s19 + $0x28] sm:$0xff] %vm410_vm0, %v1201_v62  ;;  %v1104_v57 = vadd.f32 %v1088_v22, %v1056_v31  ;;  %v1136_v46 = vmul.f32 %v1517_v30, %v1120_v13  ;;  %1432 = vpow2.f32 %v2302_v11  ;;  %v898_v43 = vmul.f32 1.442695, %v871_v54  ;;  %v2708_v54 = vld [vmem:[#allocation29_spill] sm:$0xff]  ;;  %v1520_v62 = vld [vmem:[%s1728_s12 + $0x38] sm:$0xff]  ;;  %v2712_v31 = vld [vmem:[#allocation27_spill] sm:$0xff] }
 0x147   : > { %v2384_v14 = vpop.eup %1420  ;;  %v978_v27 = vadd.f32 %v2371_v29, %v962_v21  ;;  %1434 = vpow2.f32 %v2325_v26  ;;  %v774_v19 = vsub.f32 %v2704_v41, %v758_v25  ;;  %v822_v12 = vsub.f32 %v2705_v0, %v758_v25  ;;  %v699_v41 = vpop.xlane.xlu1 %698 }
 0x148   : > { %v1152_v51 = vadd.f32 %v1136_v46, %v1104_v57  ;;  %v1184_v10 = vmul.f32 %v1168_v49, %v2706_v55  ;;  %v870_v56 = vsub.f32 %v2707_v7, %v758_v25  ;;  %v2393_v52 = vadd.f32 %v693_v6, %v1879_v36  ;;  %v2713_v46 = vld [vmem:[#allocation16_spill] sm:$0xff]  ;;  %v696_v55 = vpop.xlane.xlu0 %695 }
 0x149   : > { %v2395_v11 = vpop.eup %1422  ;;  %v994_v58 = vadd.f32 %v2384_v14, %v978_v27  ;;  %1436 = vpow2.f32 %v892_v8  ;;  %v946_v35 = vmul.f32 1.442695, %v919_v53  ;;  %v2399_v26 = vadd.f32 %v690_v34, %v1879_v36  ;;  %v2714_v34 = vld [vmem:[#allocation18_spill] sm:$0xff] }
 0x14a   : > { %v1425_v24 = vpop.eup %1424  ;;  %v1200_v44 = vadd.f32 %v1184_v10, %v1152_v51  ;;  %1438 = vpow2.f32 %v940_v2  ;;  %v800_v42 = vmul.f32 1.442695, %v774_v19  ;;  %v918_v50 = vsub.f32 %v2358_v37, %v758_v25  ;;  %v1521_v25 = vld [vmem:[%s1797_s15 + $0x38] sm:$0xff] }
 0x14b   : > { %v2402_v28 = vpop.eup %1426  ;;  %v1043_v39 = vmul.f32 %v1425_v24, %v2281_v18  ;;  %v1075_v59 = vmul.f32 %v1425_v24, %v2285_v20  ;;  %v1123_v61 = vmul.f32 %v1425_v24, %v2306_v16  ;;  %v1171_v47 = vmul.f32 %v1425_v24, %v2331_v33  ;;  %v1518_v18 = vld [vmem:[%s1623_s30 + $0x38] sm:$0xff] }
 0x14c   : > { %1216 = vst.msk [vmem:[%s2275_s19 + $0x20] sm:$0xff] %vm410_vm0, %v1200_v44  ;;  %1440 = vrcp.f32 %v994_v58  ;;  %v965_v48 = vadd.f32 %v2402_v28, %v2395_v11  ;;  %v848_v60 = vmul.f32 1.442695, %v822_v12  ;;  %v761_v15 = vmax.f32 %v2708_v54, %v2393_v52  ;;  %v1519_v20 = vld [vmem:[%s1671_s9 + $0x38] sm:$0xff]  ;;  %v2715_v12 = vld [vmem:[#allocation28_spill] sm:$0xff] }
 0x14d   : > { %v2414_v32 = vpop.eup %1428  ;;  %v1059_v3 = vmul.f32 %v1518_v18, %v1043_v39  ;;  %v1091_v8 = vmul.f32 %v1519_v20, %v1075_v59  ;;  %1442 = vpow2.f32 %v802_v4  ;;  %v2709_v16 = vld [vmem:[#allocation30_spill] sm:$0xff]  ;;  %v1139_v45 = vmul.f32 %v1520_v62, %v1123_v61  ;;  %v1524_v62 = vld [vmem:[%s1728_s12 + $0x30] sm:$0xff] }
 0x14e   : > { %v2420_v33 = vmax.f32 %v2709_v16, %v2399_v26  ;;  %v981_v37 = vadd.f32 %v2414_v32, %v965_v48  ;;  %1444 = vpow2.f32 %v850_v63  ;;  %v777_v40 = vsub.f32 %v2710_v38, %v761_v15  ;;  %v1523_v16 = vld [vmem:[%s1671_s9 + $0x30] sm:$0xff] }
 0x14f   : > { %v825_v13 = vsub.f32 %v2711_v23, %v761_v15  ;;  %v2425_v49 = vpop.eup %1430  ;;  %v1107_v2 = vadd.f32 %v1091_v8, %v1059_v3  ;;  %1446 = vpow2.f32 %v898_v43  ;;  %v873_v4 = vsub.f32 %v2712_v31, %v761_v15  ;;  %v2716_v3 = vld [vmem:[#allocation33_spill] sm:$0xff]  ;;  %v2719_v31 = vld [vmem:[#allocation31_spill] sm:$0xff] }
 0x150   : > { %v2429_v9 = vpop.eup %1432  ;;  %v997_v22 = vadd.f32 %v2425_v49, %v981_v37  ;;  %1448 = vpow2.f32 %v946_v35  ;;  %v896_v21 = vmul.f32 1.442695, %v870_v56  ;;  %v944_v63 = vmul.f32 1.442695, %v918_v50  ;;  %v1522_v8 = vld [vmem:[%s1623_s30 + $0x30] sm:$0xff]  ;;  %v2717_v37 = vld [vmem:[#allocation19_spill] sm:$0xff] }
 0x151   : > { %v2432_v53 = vpop.eup %1434  ;;  %v1155_v1 = vadd.f32 %v1139_v45, %v1107_v2  ;;  %v1187_v6 = vmul.f32 %v1521_v25, %v1171_v47  ;;  %1450 = vpow2.f32 %v800_v42  ;;  %v921_v57 = vsub.f32 %v2393_v52, %v761_v15 }
 0x152   : > { %1452 = vrcp.f32 %v997_v22  ;;  %v964_v30 = vadd.f32 %v2432_v53, %v2429_v9  ;;  %v776_v43 = vsub.f32 %v2713_v46, %v2420_v33  ;;  %v824_v27 = vsub.f32 %v2714_v34, %v2420_v33  ;;  %v2720_v22 = vld [vmem:[#allocation34_spill] sm:$0xff] }
 0x153   : > { %v2442_v19 = vpop.eup %1436  ;;  %v1203_v0 = vadd.f32 %v1187_v6, %v1155_v1  ;;  %1454 = vpow2.f32 %v848_v60  ;;  %v872_v51 = vsub.f32 %v2715_v12, %v2420_v33  ;;  %v806_v56 = vmul.f32 1.442695, %v777_v40  ;;  %v2718_v40 = vld [vmem:[#allocation21_spill] sm:$0xff] }
 0x154   : > { %v2446_v10 = vpop.eup %1438  ;;  %v980_v7 = vadd.f32 %v2442_v19, %v964_v30  ;;  %v854_v52 = vmul.f32 1.442695, %v825_v13  ;;  %v902_v58 = vmul.f32 1.442695, %v873_v4  ;;  %1456 = vpow2.f32 %v896_v21  ;;  %v1525_v1 = vld [vmem:[%s1797_s15 + $0x30] sm:$0xff] }
 0x155   : > { %1219 = vst.msk [vmem:[%s2275_s19 + $0x38] sm:$0xff] %vm410_vm0, %v1203_v0  ;;  %v950_v35 = vmul.f32 1.442695, %v921_v57  ;;  %v920_v24 = vsub.f32 %v2399_v26, %v2420_v33  ;;  %v2454_v44 = vadd.f32 %v699_v41, %v1879_v36  ;;  %1458 = vpow2.f32 %v944_v63 }
 0x156   : > { %v1441_v42 = vpop.eup %1440  ;;  %v996_v50 = vadd.f32 %v2446_v10, %v980_v7  ;;  %v804_v39 = vmul.f32 1.442695, %v776_v43  ;;  %v2458_v59 = vadd.f32 %v696_v55, %v1879_v36  ;;  %v852_v15 = vmul.f32 1.442695, %v824_v27  ;;  %v1526_v7 = vld [vmem:[%s1623_s30 + $0x48] sm:$0xff] }
 0x157   : > { %v2460_v61 = vpop.eup %1442  ;;  %v1042_v47 = vmul.f32 %v1441_v42, %v2342_v17  ;;  %v1074_v48 = vmul.f32 %v1441_v42, %v2365_v5  ;;  %v1122_v26 = vmul.f32 %v1441_v42, %v2371_v29  ;;  %v1170_v60 = vmul.f32 %v1441_v42, %v2384_v14 }
 0x158   : > { %v2466_v54 = vpop.eup %1444  ;;  %1460 = vrcp.f32 %v996_v50  ;;  %v900_v18 = vmul.f32 1.442695, %v872_v51  ;;  %v2470_v36 = vmax.f32 %v2716_v3, %v2454_v44  ;;  %v2476_v29 = vmul.f32 1.442695, %v920_v24  ;;  %v2721_v50 = vld [vmem:[#allocation20_spill] sm:$0xff] }
 0x159   : > { %v2472_v20 = vpop.eup %1446  ;;  %v1058_v17 = vmul.f32 %v1522_v8, %v1042_v47  ;;  %v1090_v5 = vmul.f32 %v1523_v16, %v1074_v48  ;;  %1462 = vpow2.f32 %v806_v56  ;;  %v967_v33 = vadd.f32 %v2466_v54, %v2460_v61  ;;  %v2723_v3 = vld [vmem:[#allocation32_spill] sm:$0xff] }
 0x15a   : > { %v2478_v14 = vpop.eup %1448  ;;  %1464 = vpow2.f32 %v854_v52  ;;  %v779_v38 = vsub.f32 %v2717_v37, %v2470_v36  ;;  %v827_v23 = vsub.f32 %v2718_v40, %v2470_v36  ;;  %v1138_v45 = vmul.f32 %v1524_v62, %v1122_v26  ;;  %v2722_v26 = vld [vmem:[#allocation22_spill] sm:$0xff]  ;;  %v1530_v40 = vld [vmem:[%s1623_s30 + $0x40] sm:$0xff] }
 0x15b   : > { %v2486_v13 = vpop.eup %1450  ;;  %v1106_v2 = vadd.f32 %v1090_v5, %v1058_v17  ;;  %v875_v4 = vsub.f32 %v2719_v31, %v2470_v36  ;;  %v2493_v21 = vmax.f32 %v2720_v22, %v2458_v59  ;;  %v1186_v25 = vmul.f32 %v1525_v1, %v1170_v60  ;;  %v1531_v62 = vld [vmem:[%s1671_s9 + $0x40] sm:$0xff] }
 0x15c   : > { %v1453_v63 = vpop.eup %1452  ;;  %v983_v6 = vadd.f32 %v2472_v20, %v967_v33  ;;  %1466 = vpow2.f32 %v902_v58  ;;  %v923_v57 = vsub.f32 %v2454_v44, %v2470_v36  ;;  %v810_v24 = vmul.f32 1.442695, %v779_v38  ;;  %v1529_v44 = vld [vmem:[%s1797_s15 + $0x48] sm:$0xff]  ;;  %v1532_v22 = vld [vmem:[%s1728_s12 + $0x40] sm:$0xff] }
 0x15d   : > { %v2499_v30 = vpop.eup %1454  ;;  %v1154_v46 = vadd.f32 %v1138_v45, %v1106_v2  ;;  %v1045_v43 = vmul.f32 %v1453_v63, %v2395_v11  ;;  %v1077_v34 = vmul.f32 %v1453_v63, %v2402_v28  ;;  %v1125_v27 = vmul.f32 %v1453_v63, %v2414_v32  ;;  %v1527_v11 = vld [vmem:[%s1671_s9 + $0x48] sm:$0xff] }
 0x15e   : > { %v1173_v41 = vmul.f32 %v1453_v63, %v2425_v49  ;;  %v999_v0 = vadd.f32 %v2478_v14, %v983_v6  ;;  %v966_v12 = vadd.f32 %v2499_v30, %v2486_v13  ;;  %1468 = vpow2.f32 %v950_v35  ;;  %v2508_v51 = vpop.eup %1456  ;;  %v1528_v32 = vld [vmem:[%s1728_s12 + $0x48] sm:$0xff]  ;;  %v1533_v6 = vld [vmem:[%s1797_s15 + $0x40] sm:$0xff] }
 0x15f   : > { %v1202_v55 = vadd.f32 %v1186_v25, %v1154_v46  ;;  %v1061_v56 = vmul.f32 %v1526_v7, %v1045_v43  ;;  %v1093_v52 = vmul.f32 %v1527_v11, %v1077_v34  ;;  %1470 = vpow2.f32 %v804_v39  ;;  %v2512_v28 = vpop.eup %1458 }
 0x160   : > { %v1141_v49 = vmul.f32 %v1528_v32, %v1125_v27  ;;  %1472 = vrcp.f32 %v999_v0  ;;  %v982_v58 = vadd.f32 %v2508_v51, %v966_v12  ;;  %v1189_v42 = vmul.f32 %v1529_v44, %v1173_v41 }
 0x161   : > { %1218 = vst.msk [vmem:[%s2275_s19 + $0x30] sm:$0xff] %vm410_vm0, %v1202_v55  ;;  %v1109_v35 = vadd.f32 %v1093_v52, %v1061_v56  ;;  %1474 = vpow2.f32 %v852_v15  ;;  %v778_v47 = vsub.f32 %v2721_v50, %v2493_v21  ;;  %v826_v60 = vsub.f32 %v2722_v26, %v2493_v21 }
 0x162   : > { %v1461_v48 = vpop.eup %1460  ;;  %v998_v39 = vadd.f32 %v2512_v28, %v982_v58  ;;  %1476 = vpow2.f32 %v900_v18  ;;  %v874_v36 = vsub.f32 %v2723_v3, %v2493_v21  ;;  %v858_v37 = vmul.f32 1.442695, %v827_v23 }
 0x163   : > { %v2526_v8 = vpop.eup %1462  ;;  %v1157_v17 = vadd.f32 %v1141_v49, %v1109_v35  ;;  %v1044_v15 = vmul.f32 %v1461_v48, %v2429_v9  ;;  %v1076_v16 = vmul.f32 %v1461_v48, %v2432_v53  ;;  %v1124_v5 = vmul.f32 %v1461_v48, %v2442_v19  ;;  %v1535_v49 = vld [vmem:[%s1671_s9 + $0x58] sm:$0xff] }
 0x164   : > { %v2531_v33 = vpop.eup %1464  ;;  %v1172_v18 = vmul.f32 %v1461_v48, %v2446_v10  ;;  %1478 = vrcp.f32 %v998_v39  ;;  %v906_v31 = vmul.f32 1.442695, %v875_v4  ;;  %v954_v19 = vmul.f32 1.442695, %v923_v57 }
 0x165   : > { %v1205_v38 = vadd.f32 %v1189_v42, %v1157_v17  ;;  %v1060_v2 = vmul.f32 %v1530_v40, %v1044_v15  ;;  %v1092_v45 = vmul.f32 %v1531_v62, %v1076_v16  ;;  %v969_v53 = vadd.f32 %v2531_v33, %v2526_v8  ;;  %v1539_v15 = vld [vmem:[%s1671_s9 + $0x50] sm:$0xff] }
 0x166   : > { %v2536_v9 = vpop.eup %1466  ;;  %1480 = vpow2.f32 %v2476_v29  ;;  %v1140_v23 = vmul.f32 %v1532_v22, %v1124_v5  ;;  %v1188_v46 = vmul.f32 %v1533_v6, %v1172_v18  ;;  %v808_v43 = vmul.f32 1.442695, %v778_v47  ;;  %v1541_v62 = vld [vmem:[%s1797_s15 + $0x50] sm:$0xff] }
 0x167   : > { %1221 = vst.msk [vmem:[%s2275_s19 + $0x48] sm:$0xff] %vm410_vm0, %v1205_v38  ;;  %v1108_v10 = vadd.f32 %v1092_v45, %v1060_v2  ;;  %1482 = vpow2.f32 %v810_v24  ;;  %v985_v1 = vadd.f32 %v2536_v9, %v969_v53  ;;  %v856_v34 = vmul.f32 1.442695, %v826_v60  ;;  %v1537_v60 = vld [vmem:[%s1797_s15 + $0x58] sm:$0xff] }
 0x168   : > { %v2544_v63 = vpop.eup %1468  ;;  %1484 = vpow2.f32 %v858_v37  ;;  %v922_v27 = vsub.f32 %v2458_v59, %v2493_v21  ;;  %v904_v32 = vmul.f32 1.442695, %v874_v36  ;;  %v1534_v59 = vld [vmem:[%s1623_s30 + $0x58] sm:$0xff]  ;;  %v1538_v36 = vld [vmem:[%s1623_s30 + $0x50] sm:$0xff] }
 0x169   : > { %v2547_v4 = vpop.eup %1470  ;;  %v1156_v25 = vadd.f32 %v1140_v23, %v1108_v10  ;;  %1486 = vpow2.f32 %v906_v31  ;;  %v1001_v57 = vadd.f32 %v2544_v63, %v985_v1 }
 0x16a   : > { %v1473_v29 = vpop.eup %1472  ;;  %1488 = vpow2.f32 %v954_v19 }
 0x16b   : > { %v2553_v41 = vpop.eup %1474  ;;  %v1204_v0 = vadd.f32 %v1188_v46, %v1156_v25  ;;  %v1047_v12 = vmul.f32 %v1473_v29, %v2460_v61  ;;  %v1079_v55 = vmul.f32 %v1473_v29, %v2466_v54  ;;  %v1127_v7 = vmul.f32 %v1473_v29, %v2472_v20  ;;  %v1536_v54 = vld [vmem:[%s1728_s12 + $0x58] sm:$0xff] }
 0x16c   : > { %v2558_v56 = vpop.eup %1476  ;;  %v1175_v11 = vmul.f32 %v1473_v29, %v2478_v14  ;;  %1490 = vrcp.f32 %v1001_v57  ;;  %v968_v52 = vadd.f32 %v2553_v41, %v2547_v4  ;;  %v952_v14 = vmul.f32 1.442695, %v922_v27  ;;  %v1543_v57 = vld [vmem:[%s1671_s9 + $0x68] sm:$0xff] }
 0x16d   : > { %1220 = vst.msk [vmem:[%s2275_s19 + $0x40] sm:$0xff] %vm410_vm0, %v1204_v0  ;;  %v1063_v21 = vmul.f32 %v1534_v59, %v1047_v12  ;;  %v1095_v58 = vmul.f32 %v1535_v49, %v1079_v55  ;;  %1492 = vpow2.f32 %v808_v43  ;;  %v1143_v20 = vmul.f32 %v1536_v54, %v1127_v7  ;;  %v1542_v43 = vld [vmem:[%s1623_s30 + $0x68] sm:$0xff]  ;;  %v1546_v54 = vld [vmem:[%s1623_s30 + $0x60] sm:$0xff] }
 0x16e   : > { %v1479_v61 = vpop.eup %1478  ;;  %v984_v24 = vadd.f32 %v2558_v56, %v968_v52  ;;  %1494 = vpow2.f32 %v856_v34  ;;  %v1191_v3 = vmul.f32 %v1537_v60, %v1175_v11  ;;  %v1545_v7 = vld [vmem:[%s1797_s15 + $0x68] sm:$0xff] }
 0x16f   : > { %v1111_v35 = vadd.f32 %v1095_v58, %v1063_v21  ;;  %v1046_v44 = vmul.f32 %v1479_v61, %v2486_v13  ;;  %v1078_v42 = vmul.f32 %v1479_v61, %v2499_v30  ;;  %v1126_v50 = vmul.f32 %v1479_v61, %v2508_v51 }
 0x170   : > { %v1481_v47 = vpop.eup %1480  ;;  %v1174_v48 = vmul.f32 %v1479_v61, %v2512_v28  ;;  %1496 = vpow2.f32 %v904_v32  ;;  %v1540_v28 = vld [vmem:[%s1728_s12 + $0x50] sm:$0xff] }
 0x171   : > { %v2573_v39 = vpop.eup %1482  ;;  %v1159_v26 = vadd.f32 %v1143_v20, %v1111_v35  ;;  %v1062_v17 = vmul.f32 %v1538_v36, %v1046_v44  ;;  %v1094_v13 = vmul.f32 %v1539_v15, %v1078_v42  ;;  %v1000_v30 = vadd.f32 %v1481_v47, %v984_v24  ;;  %v1547_v24 = vld [vmem:[%s1671_s9 + $0x60] sm:$0xff]  ;;  %v1550_v36 = vld [vmem:[%s1623_s30 + $0x78] sm:$0xff] }
 0x172   : > { %v1485_v16 = vpop.eup %1484  ;;  %1498 = vpow2.f32 %v952_v14  ;;  %v1142_v37 = vmul.f32 %v1540_v28, %v1126_v50  ;;  %v1190_v45 = vmul.f32 %v1541_v62, %v1174_v48  ;;  %v1548_v44 = vld [vmem:[%s1728_s12 + $0x60] sm:$0xff]  ;;  %v1551_v15 = vld [vmem:[%s1671_s9 + $0x78] sm:$0xff] }
 0x173   : > { %v1487_v51 = vpop.eup %1486  ;;  %v1207_v5 = vadd.f32 %v1191_v3, %v1159_v26  ;;  %v1110_v18 = vadd.f32 %v1094_v13, %v1062_v17  ;;  %v971_v38 = vadd.f32 %v1485_v16, %v2573_v39  ;;  %1500 = vrcp.f32 %v1000_v30  ;;  %v1549_v50 = vld [vmem:[%s1797_s15 + $0x60] sm:$0xff] }
 0x174   : > { %v1489_v40 = vpop.eup %1488 }
 0x175   : > { %1223 = vst.msk [vmem:[%s2275_s19 + $0x58] sm:$0xff] %vm410_vm0, %v1207_v5  ;;  %v1158_v2 = vadd.f32 %v1142_v37, %v1110_v18  ;;  %v987_v31 = vadd.f32 %v1487_v51, %v971_v38  ;;  %v1552_v5 = vld [vmem:[%s1728_s12 + $0x78] sm:$0xff] }
 0x176   : > { %v1491_v53 = vpop.eup %1490  ;;  %v1553_v37 = vld [vmem:[%s1797_s15 + $0x78] sm:$0xff] }
 0x177   : > { %v1493_v19 = vpop.eup %1492  ;;  %v1206_v10 = vadd.f32 %v1190_v45, %v1158_v2  ;;  %v1049_v22 = vmul.f32 %v1491_v53, %v2526_v8  ;;  %v1081_v23 = vmul.f32 %v1491_v53, %v2531_v33  ;;  %v1129_v1 = vmul.f32 %v1491_v53, %v2536_v9  ;;  %v1544_v8 = vld [vmem:[%s1728_s12 + $0x68] sm:$0xff]  ;;  %v1554_v45 = vld [vmem:[%s1623_s30 + $0x70] sm:$0xff] }
 0x178   : > { %v1495_v25 = vpop.eup %1494  ;;  %v1177_v6 = vmul.f32 %v1491_v53, %v2544_v63  ;;  %v1003_v46 = vadd.f32 %v1489_v40, %v987_v31  ;;  %v1555_v53 = vld [vmem:[%s1671_s9 + $0x70] sm:$0xff] }
 0x179   : > { %1222 = vst.msk [vmem:[%s2275_s19 + $0x50] sm:$0xff] %vm410_vm0, %v1206_v10  ;;  %v1065_v29 = vmul.f32 %v1542_v43, %v1049_v22  ;;  %v1097_v34 = vmul.f32 %v1543_v57, %v1081_v23  ;;  %v970_v27 = vadd.f32 %v1495_v25, %v1493_v19  ;;  %v1145_v33 = vmul.f32 %v1544_v8, %v1129_v1  ;;  %v1556_v23 = vld [vmem:[%s1728_s12 + $0x70] sm:$0xff] }
 0x17a   : > { %v1497_v0 = vpop.eup %1496  ;;  %1502 = vrcp.f32 %v1003_v46  ;;  %v1193_v11 = vmul.f32 %v1545_v7, %v1177_v6  ;;  %v1557_v46 = vld [vmem:[%s1797_s15 + $0x70] sm:$0xff] }
 0x17b   : > { %v1113_v12 = vadd.f32 %v1097_v34, %v1065_v29  ;;  %v986_v9 = vadd.f32 %v1497_v0, %v970_v27 }
 0x17c   : > { %v1499_v55 = vpop.eup %1498 }
 0x17d   : > { %v1161_v63 = vadd.f32 %v1145_v33, %v1113_v12  ;;  %v1002_v52 = vadd.f32 %v1499_v55, %v986_v9  ;;  %v1501_v32 = vpop.eup %1500 }
 0x17e   : > { %v1048_v21 = vmul.f32 %v1501_v32, %v2547_v4  ;;  %v1080_v49 = vmul.f32 %v1501_v32, %v2553_v41  ;;  %v1128_v58 = vmul.f32 %v1501_v32, %v2558_v56  ;;  %v1176_v61 = vmul.f32 %v1501_v32, %v1481_v47 }
 0x17f   : > { %v1209_v59 = vadd.f32 %v1193_v11, %v1161_v63  ;;  %1504 = vrcp.f32 %v1002_v52 }
 0x180   : > { %v1064_v20 = vmul.f32 %v1546_v54, %v1048_v21  ;;  %v1096_v14 = vmul.f32 %v1547_v24, %v1080_v49  ;;  %v1144_v42 = vmul.f32 %v1548_v44, %v1128_v58  ;;  %v1192_v41 = vmul.f32 %v1549_v50, %v1176_v61 }
 0x181   : > { %1225 = vst.msk [vmem:[%s2275_s19 + $0x68] sm:$0xff] %vm410_vm0, %v1209_v59 }
 0x182   : > { %v1112_v35 = vadd.f32 %v1096_v14, %v1064_v20 }
 0x184   : > { %v1503_v4 = vpop.eup %1502  ;;  %v1160_v56 = vadd.f32 %v1144_v42, %v1112_v35 }
 0x185   : > { %v1051_v47 = vmul.f32 %v1503_v4, %v2573_v39  ;;  %v1083_v48 = vmul.f32 %v1503_v4, %v1485_v16  ;;  %v1131_v26 = vmul.f32 %v1503_v4, %v1487_v51  ;;  %v1179_v60 = vmul.f32 %v1503_v4, %v1489_v40 }
 0x186   : > { %v1208_v3 = vadd.f32 %v1192_v41, %v1160_v56 }
 0x187   : > { %v1067_v17 = vmul.f32 %v1550_v36, %v1051_v47  ;;  %v1099_v13 = vmul.f32 %v1551_v15, %v1083_v48  ;;  %v1147_v18 = vmul.f32 %v1552_v5, %v1131_v26  ;;  %v1195_v39 = vmul.f32 %v1553_v37, %v1179_v60 }
 0x188   : > { %1224 = vst.msk [vmem:[%s2275_s19 + $0x60] sm:$0xff] %vm410_vm0, %v1208_v3 }
 0x189   : > { %v1115_v30 = vadd.f32 %v1099_v13, %v1067_v17  ;;  %v1505_v28 = vpop.eup %1504 }
 0x18a   : > { %v1050_v51 = vmul.f32 %v1505_v28, %v1493_v19  ;;  %v1082_v38 = vmul.f32 %v1505_v28, %v1495_v25  ;;  %v1130_v40 = vmul.f32 %v1505_v28, %v1497_v0  ;;  %v1178_v2 = vmul.f32 %v1505_v28, %v1499_v55 }
 0x18b   : > { %v1163_v16 = vadd.f32 %v1147_v18, %v1115_v30 }
 0x18c   : > { %v1066_v31 = vmul.f32 %v1554_v45, %v1050_v51  ;;  %v1098_v10 = vmul.f32 %v1555_v53, %v1082_v38  ;;  %v1146_v1 = vmul.f32 %v1556_v23, %v1130_v40  ;;  %v1194_v43 = vmul.f32 %v1557_v46, %v1178_v2 }
 0x18d   : > { %v1211_v62 = vadd.f32 %v1195_v39, %v1163_v16 }
 0x18e   : > { %v1114_v22 = vadd.f32 %v1098_v10, %v1066_v31 }
 0x18f   : > { %1227 = vst.msk [vmem:[%s2275_s19 + $0x78] sm:$0xff] %vm410_vm0, %v1211_v62 }
 0x190   : > { %v1162_v6 = vadd.f32 %v1146_v1, %v1114_v22 }
 0x192   : > { %v1210_v29 = vadd.f32 %v1194_v43, %v1162_v6 }
 0x194   : > { %1226 = vst.msk [vmem:[%s2275_s19 + $0x70] sm:$0xff] %vm410_vm0, %v1210_v29 }
 0x195 PF: > { %s17_s23 = sadd.s32 1, %s1564_s23  }
 0x196   : > { %p14_p4 = scmp.ge.s32.totalorder %s17_s23, 4  }
 0x198   :  { %16 = sbr.rel (!%p14_p4) target bundleno = 2 (0x2), region = 83 }

</bundles_post_ra>
